<compile_context>
chip_gen: v7x
topology: tpu7x:2x2x1
jax: 0.10.0
libtpu: 0.0.40
codegen_flags: <defaults>
</compile_context>

<pallas_src>
import functools

import jax
import jax.numpy as jnp
from jax.experimental import pallas as pl
from jax.experimental.pallas import tpu as pltpu


_VMEM_LIMIT_BYTES = 32 * 1024 * 1024


# ----------------------------------------------------------------------------
# Pallas kernel: Y^T[co, m] = act( sum_k W[co, k] * X^T[k, m] + b[co] )
# Lane dim of the output block is the pixel axis m -> lane-dense stores.
# ----------------------------------------------------------------------------
def _matmul_bias_act_t_kernel(w_ref, x_ref, b_ref, o_ref, *, relu: bool):
    acc = jnp.dot(w_ref[...], x_ref[...], preferred_element_type=jnp.float32)
    acc = acc + b_ref[...]                      # (Cout, 1) broadcasts over lanes
    if relu:
        acc = jnp.maximum(acc, 0.0)
    o_ref[...] = acc.astype(o_ref.dtype)


def matmul_bias_act_t(w, x_t, b, *, relu, compute_dtype=jnp.float32, tm=256):
    """w: (Cout, K), x_t: (K, M), b: (Cout,) -> (Cout, M) float32."""
    Cout, K = w.shape
    K2, M = x_t.shape
    assert K == K2
    # Lane tile over the pixel axis: multiple of 128 when possible (dense stores),
    # full-array block for the tiny trailing layers (M < 128).
    if M >= tm:
        TM = tm
    elif M >= 128:
        TM = 128
    else:
        TM = M
    grid_m = pl.cdiv(M, TM)

    kernel = functools.partial(_matmul_bias_act_t_kernel, relu=relu)
    return pl.pallas_call(
        kernel,
        out_shape=jax.ShapeDtypeStruct((Cout, M), jnp.float32),
        grid=(grid_m,),
        in_specs=[
            pl.BlockSpec((Cout, K), lambda i: (0, 0)),   # weights: VMEM-resident
            pl.BlockSpec((K, TM), lambda i: (0, i)),     # patches: streamed over M
            pl.BlockSpec((Cout, 1), lambda i: (0, 0)),   # bias (f32 epilogue)
        ],
        out_specs=pl.BlockSpec((Cout, TM), lambda i: (0, i)),
        compiler_params=pltpu.CompilerParams(
            dimension_semantics=("parallel",),
            vmem_limit_bytes=_VMEM_LIMIT_BYTES),
    )(w.astype(compute_dtype), x_t.astype(compute_dtype),
      b.reshape(Cout, 1).astype(jnp.float32))


# ----------------------------------------------------------------------------
# Pallas kernel: fused head+out (no ReLU between them, so fusion is exact algebra)
#   out^T = (out_w[:, :32] @ head_w) @ flat^T + out_w[:, 32:] @ speed^T + b_fused
# ----------------------------------------------------------------------------
def _fused_head_out_kernel(wf_ref, x_ref, ws_ref, s_ref, b_ref, o_ref):
    acc = jnp.dot(wf_ref[...], x_ref[...], preferred_element_type=jnp.float32)
    acc = acc + jnp.dot(ws_ref[...], s_ref[...], preferred_element_type=jnp.float32)
    o_ref[...] = (acc + b_ref[...]).astype(o_ref.dtype)


def fused_head_out_t(wf_t, flat_t, ws, speed_t, b_fused):
    """wf_t: (A, Lin), flat_t: (Lin, N), ws: (A, 2), speed_t: (2, N) -> (A, N)."""
    A, Lin = wf_t.shape
    _, N = flat_t.shape
    return pl.pallas_call(
        _fused_head_out_kernel,
        out_shape=jax.ShapeDtypeStruct((A, N), jnp.float32),
        grid=(1,),
        in_specs=[
            pl.BlockSpec((A, Lin), lambda i: (0, 0)),
            pl.BlockSpec((Lin, N), lambda i: (0, 0)),
            pl.BlockSpec((A, 2), lambda i: (0, 0)),
            pl.BlockSpec((2, N), lambda i: (0, 0)),
            pl.BlockSpec((A, 1), lambda i: (0, 0)),
        ],
        out_specs=pl.BlockSpec((A, N), lambda i: (0, 0)),
        compiler_params=pltpu.CompilerParams(
            dimension_semantics=("arbitrary",),
            vmem_limit_bytes=_VMEM_LIMIT_BYTES),
    )(wf_t.astype(jnp.float32), flat_t.astype(jnp.float32),
      ws.astype(jnp.float32), speed_t.astype(jnp.float32),
      b_fused.reshape(A, 1).astype(jnp.float32))


# ----------------------------------------------------------------------------
# Plain-JAX glue: transposed patch extraction (strided slices + one stack,
# no per-layer activation transposes).
# ----------------------------------------------------------------------------
def extract_patches_cm(x_cnhw, k, stride):
    """x: (C, N, H, W) -> patches^T (C*k*k, N*Ho*Wo); row index = c*k*k + (i*k + j)."""
    C, N, H, W = x_cnhw.shape
    Ho = (H - k) // stride + 1
    Wo = (W - k) // stride + 1
    taps = []
    for i in range(k):
        for j in range(k):
            taps.append(
                x_cnhw[:, :, i:i + stride * Ho:stride, j:j + stride * Wo:stride])
    p = jnp.stack(taps, axis=1)                       # (C, k*k, N, Ho, Wo)
    # TODO(synk): accumulate taps inside the Pallas kernel (extra "arbitrary" grid
    # axis over the k*k taps) to avoid materializing the duplicated patch matrix in
    # HBM for large batches.
    return p.reshape(C * k * k, N * Ho * Wo), Ho, Wo


def conv_bn_relu_t(x_cnhw, w_oihw, b_o, *, k, stride, compute_dtype):
    """Conv2d (VALID, stride) + folded-BN bias + ReLU in channels-leading layout."""
    Cout = w_oihw.shape[0]
    N = x_cnhw.shape[1]
    patches_t, Ho, Wo = extract_patches_cm(x_cnhw, k, stride)
    w_mat = w_oihw.reshape(Cout, -1)        # OIHW flatten: col index = cin*k*k + i*k + j
    y_t = matmul_bias_act_t(w_mat, patches_t, b_o, relu=True,
                            compute_dtype=compute_dtype)        # (Cout, N*Ho*Wo)
    return y_t.reshape(Cout, N, Ho, Wo)


# ----------------------------------------------------------------------------
# Parameter construction (deterministic, synthetic) and BN folding
# ----------------------------------------------------------------------------
def conv2d_size_out(size, kernel_size=5, stride=2):
    return (size - (kernel_size - 1) - 1) // stride + 1


def init_dqn_params(key, h, w, n_actions):
    convw = conv2d_size_out(conv2d_size_out(conv2d_size_out(w)))
    convh = conv2d_size_out(conv2d_size_out(conv2d_size_out(h)))
    linear_input_size = convw * convh * 32

    keys = jax.random.split(key, 10)

    def rnd(k, shape, fan_in):
        bound = 1.0 / (fan_in ** 0.5)
        return jax.random.uniform(k, shape, dtype=jnp.float32,
                                  minval=-bound, maxval=bound)

    params = {
        "conv1_w": rnd(keys[0], (16, 4, 5, 5), 4 * 25),
        "conv1_b": rnd(keys[1], (16,), 4 * 25),
        "conv2_w": rnd(keys[2], (32, 16, 5, 5), 16 * 25),
        "conv2_b": rnd(keys[3], (32,), 16 * 25),
        "conv3_w": rnd(keys[4], (32, 32, 5, 5), 32 * 25),
        "conv3_b": rnd(keys[5], (32,), 32 * 25),
        "head_w": rnd(keys[6], (32, linear_input_size), linear_input_size),
        "head_b": rnd(keys[7], (32,), linear_input_size),
        "out_w": rnd(keys[8], (n_actions, 34), 34),
        "out_b": rnd(keys[9], (n_actions,), 34),
    }
    # BatchNorm2d default params / running stats (eval-mode semantics)
    for name, c in (("bn1", 16), ("bn2", 32), ("bn3", 32)):
        params[f"{name}_gamma"] = jnp.ones((c,), jnp.float32)
        params[f"{name}_beta"] = jnp.zeros((c,), jnp.float32)
        params[f"{name}_mean"] = jnp.zeros((c,), jnp.float32)
        params[f"{name}_var"] = jnp.ones((c,), jnp.float32)
    return params


def fold_bn(conv_w, conv_b, gamma, beta, mean, var, eps=1e-5):
    scale = gamma / jnp.sqrt(var + eps)
    w = conv_w * scale[:, None, None, None]
    b = (conv_b - mean) * scale + beta
    return w, b


# ----------------------------------------------------------------------------
# Full forward pass
# ----------------------------------------------------------------------------
def dqn_forward(params, x, speed, *, compute_dtype=jnp.float32):
    """x: (N, 4, H, W) f32 NCHW, speed: (N, 2) f32 -> (N, n_actions) f32."""
    w1, b1 = fold_bn(params["conv1_w"], params["conv1_b"], params["bn1_gamma"],
                     params["bn1_beta"], params["bn1_mean"], params["bn1_var"])
    w2, b2 = fold_bn(params["conv2_w"], params["conv2_b"], params["bn2_gamma"],
                     params["bn2_beta"], params["bn2_mean"], params["bn2_var"])
    w3, b3 = fold_bn(params["conv3_w"], params["conv3_b"], params["bn3_gamma"],
                     params["bn3_beta"], params["bn3_mean"], params["bn3_var"])

    # Channels-leading layout (C, N, H, W): one tiny transpose of the input only.
    xt = jnp.transpose(x.astype(jnp.float32), (1, 0, 2, 3))
    a1 = conv_bn_relu_t(xt, w1, b1, k=5, stride=2, compute_dtype=compute_dtype)
    a2 = conv_bn_relu_t(a1, w2, b2, k=5, stride=2, compute_dtype=compute_dtype)
    a3 = conv_bn_relu_t(a2, w3, b3, k=5, stride=2, compute_dtype=compute_dtype)

    # flat^T row index = c*convh*convw + oh*convw + ow  == torch NCHW .view(N, -1) order
    C3, N, ch, cw = a3.shape
    flat_t = jnp.transpose(a3, (0, 2, 3, 1)).reshape(C3 * ch * cw, N)

    # Algebraic head+out fusion (no ReLU between them in the original module).
    wf_t = params["out_w"][:, :32] @ params["head_w"]                     # (A, Lin)
    ws = params["out_w"][:, 32:]                                          # (A, 2)
    b_fused = params["out_w"][:, :32] @ params["head_b"] + params["out_b"]

    out_t = fused_head_out_t(wf_t, flat_t, ws,
                             jnp.transpose(speed.astype(jnp.float32)), b_fused)
    return jnp.transpose(out_t)                                           # (N, A)


# ----------------------------------------------------------------------------
# Pure-JAX reference (for correctness check)
# ----------------------------------------------------------------------------
def dqn_forward_ref(params, x, speed):
    def conv(x, w, b):
        y = jax.lax.conv_general_dilated(
            x, w, window_strides=(2, 2), padding="VALID",
            dimension_numbers=("NCHW", "OIHW", "NCHW"))
        return jnp.maximum(y + b[None, :, None, None], 0.0)

    w1, b1 = fold_bn(params["conv1_w"], params["conv1_b"], params["bn1_gamma"],
                     params["bn1_beta"], params["bn1_mean"], params["bn1_var"])
    w2, b2 = fold_bn(params["conv2_w"], params["conv2_b"], params["bn2_gamma"],
                     params["bn2_beta"], params["bn2_mean"], params["bn2_var"])
    w3, b3 = fold_bn(params["conv3_w"], params["conv3_b"], params["bn3_gamma"],
                     params["bn3_beta"], params["bn3_mean"], params["bn3_var"])
    x = conv(conv(conv(x, w1, b1), w2, b2), w3, b3)
    flat = x.reshape(x.shape[0], -1)
    head = flat @ params["head_w"].T + params["head_b"]
    linear_in = jnp.concatenate([head, speed], axis=1)
    return linear_in @ params["out_w"].T + params["out_b"]


if __name__ == "__main__":
    # Shape-consistent config: h=w=32 -> conv stack 32->14->5->1 -> head in = 32.
    N, H, W, n_actions = 2, 32, 32, 5

    key = jax.random.PRNGKey(0)
    kx, ksp, kp = jax.random.split(key, 3)
    x = jax.random.normal(kx, (N, 4, H, W), dtype=jnp.float32)   # NCHW, like PyTorch
    speed = jax.random.normal(ksp, (N, 2), dtype=jnp.float32)    # 32 + 2 = 34 features
    params = init_dqn_params(kp, H, W, n_actions)

    fwd_f32 = jax.jit(functools.partial(dqn_forward, compute_dtype=jnp.float32))
    fwd_bf16 = jax.jit(functools.partial(dqn_forward, compute_dtype=jnp.bfloat16))

    ref = jax.block_until_ready(dqn_forward_ref(params, x, speed))

    out_f32 = jax.block_until_ready(fwd_f32(params, x, speed))
    assert out_f32.shape == (N, n_actions)
    assert jnp.allclose(out_f32, ref, rtol=5e-3, atol=5e-3), \
        "Pallas f32 output mismatch vs reference"

    # bf16 MXU fast path (v6e/v7x): bf16 operands, f32 accumulation + epilogue.
    out_bf16 = jax.block_until_ready(fwd_bf16(params, x, speed))
    assert out_bf16.shape == (N, n_actions)
    assert bool(jnp.all(jnp.isfinite(out_bf16)))
    assert jnp.allclose(out_bf16, ref, rtol=5e-2, atol=5e-2), \
        "Pallas bf16 output mismatch vs reference"

    print("KERNEL_OK")
</pallas_src>

<mosaic_0001>
module attributes {stable_mosaic.version = 11 : i64} {
  func.func @_matmul_bias_act_t_kernel(%arg0: i32, %arg1: memref<16x100xf32, #tpu.memory_space<vmem>>, %arg2: memref<100x256xf32, #tpu.memory_space<vmem>>, %arg3: memref<16x1xf32, #tpu.memory_space<vmem>>, %arg4: memref<16x256xf32, #tpu.memory_space<vmem>>) attributes {dimension_semantics = [#tpu.dimension_semantics<parallel>], iteration_bounds = array<i64: 2>, scalar_prefetch = 0 : i64, scratch_operands = 0 : i64, tpu.core_type = #tpu.core_type<tc>, window_params = [{pipeline_mode = #tpu.pipeline_mode<synchronous>, transform_indices = @transform_0, window_bounds = array<i64: 16, 100>}, {transform_indices = @transform_1, window_bounds = array<i64: 100, 256>}, {pipeline_mode = #tpu.pipeline_mode<synchronous>, transform_indices = @transform_2, window_bounds = array<i64: 16, 1>}, {transform_indices = @transform_3, window_bounds = array<i64: 16, 256>}]} {
    %c0 = arith.constant 0 : index
    %c0_0 = arith.constant 0 : index
    %0 = vector.load %arg1[%c0, %c0_0] : memref<16x100xf32, #tpu.memory_space<vmem>>, vector<16x100xf32>
    %c0_1 = arith.constant 0 : index
    %c0_2 = arith.constant 0 : index
    %1 = vector.load %arg2[%c0_1, %c0_2] : memref<100x256xf32, #tpu.memory_space<vmem>>, vector<100x256xf32>
    %cst = arith.constant dense<0.000000e+00> : vector<16x256xf32>
    %2 = tpu.matmul %0, %1, %cst {dimension_numbers = #tpu.dot_dimension_numbers<[1], [0], [0], [1], [0, 0, 1, 1], [], []>} : vector<16x100xf32>, vector<100x256xf32>, vector<16x256xf32> -> vector<16x256xf32>
    %c0_3 = arith.constant 0 : index
    %c0_4 = arith.constant 0 : index
    %3 = vector.load %arg3[%c0_3, %c0_4] : memref<16x1xf32, #tpu.memory_space<vmem>>, vector<16x1xf32>
    %4 = vector.broadcast %3 : vector<16x1xf32> to vector<16x256xf32>
    %5 = arith.addf %2, %4 : vector<16x256xf32>
    %cst_5 = arith.constant 0.000000e+00 : f32
    %6 = vector.broadcast %cst_5 : f32 to vector<16x256xf32>
    %7 = arith.maximumf %5, %6 : vector<16x256xf32>
    %c0_6 = arith.constant 0 : index
    %c0_7 = arith.constant 0 : index
    %8 = vector.load %arg4[%c0_6, %c0_7] : memref<16x256xf32, #tpu.memory_space<vmem>>, vector<16x256xf32>
    tpu.vector_store %arg4[%c0_6, %c0_7], %7 {strides = array<i32>} : memref<16x256xf32, #tpu.memory_space<vmem>>, vector<16x256xf32>,
    return
  }
  func.func @transform_0(%arg0: i32) -> (i32, i32) {
    %c0_i32 = arith.constant 0 : i32
    %c0_i32_0 = arith.constant 0 : i32
    %c0_i32_1 = arith.constant 0 : i32
    return %c0_i32, %c0_i32_0 : i32, i32
  }
  func.func @transform_1(%arg0: i32) -> (i32, i32) {
    %c0_i32 = arith.constant 0 : i32
    %c0_i32_0 = arith.constant 0 : i32
    return %c0_i32, %arg0 : i32, i32
  }
  func.func @transform_2(%arg0: i32) -> (i32, i32) {
    %c0_i32 = arith.constant 0 : i32
    %c0_i32_0 = arith.constant 0 : i32
    %c0_i32_1 = arith.constant 0 : i32
    return %c0_i32, %c0_i32_0 : i32, i32
  }
  func.func @transform_3(%arg0: i32) -> (i32, i32) {
    %c0_i32 = arith.constant 0 : i32
    %c0_i32_0 = arith.constant 0 : i32
    return %c0_i32, %arg0 : i32, i32
  }
}

module attributes {stable_mosaic.version = 11 : i64} {
  func.func @_matmul_bias_act_t_kernel(%arg0: i32, %arg1: memref<32x400xf32, #tpu.memory_space<vmem>>, %arg2: memref<400x50xf32, #tpu.memory_space<vmem>>, %arg3: memref<32x1xf32, #tpu.memory_space<vmem>>, %arg4: memref<32x50xf32, #tpu.memory_space<vmem>>) attributes {dimension_semantics = [#tpu.dimension_semantics<parallel>], iteration_bounds = array<i64: 1>, scalar_prefetch = 0 : i64, scratch_operands = 0 : i64, tpu.core_type = #tpu.core_type<tc>, window_params = [{pipeline_mode = #tpu.pipeline_mode<synchronous>, transform_indices = @transform_0, window_bounds = array<i64: 32, 400>}, {transform_indices = @transform_1, window_bounds = array<i64: 400, 50>}, {pipeline_mode = #tpu.pipeline_mode<synchronous>, transform_indices = @transform_2, window_bounds = array<i64: 32, 1>}, {transform_indices = @transform_3, window_bounds = array<i64: 32, 50>}]} {
    %c0 = arith.constant 0 : index
    %c0_0 = arith.constant 0 : index
    %0 = vector.load %arg1[%c0, %c0_0] : memref<32x400xf32, #tpu.memory_space<vmem>>, vector<32x400xf32>
    %c0_1 = arith.constant 0 : index
    %c0_2 = arith.constant 0 : index
    %1 = vector.load %arg2[%c0_1, %c0_2] : memref<400x50xf32, #tpu.memory_space<vmem>>, vector<400x50xf32>
    %cst = arith.constant dense<0.000000e+00> : vector<32x50xf32>
    %2 = tpu.matmul %0, %1, %cst {dimension_numbers = #tpu.dot_dimension_numbers<[1], [0], [0], [1], [0, 0, 1, 1], [], []>} : vector<32x400xf32>, vector<400x50xf32>, vector<32x50xf32> -> vector<32x50xf32>
    %c0_3 = arith.constant 0 : index
    %c0_4 = arith.constant 0 : index
    %3 = vector.load %arg3[%c0_3, %c0_4] : memref<32x1xf32, #tpu.memory_space<vmem>>, vector<32x1xf32>
    %4 = vector.broadcast %3 : vector<32x1xf32> to vector<32x50xf32>
    %5 = arith.addf %2, %4 : vector<32x50xf32>
    %cst_5 = arith.constant 0.000000e+00 : f32
    %6 = vector.broadcast %cst_5 : f32 to vector<32x50xf32>
    %7 = arith.maximumf %5, %6 : vector<32x50xf32>
    %c0_6 = arith.constant 0 : index
    %c0_7 = arith.constant 0 : index
    %8 = vector.load %arg4[%c0_6, %c0_7] : memref<32x50xf32, #tpu.memory_space<vmem>>, vector<32x50xf32>
    tpu.vector_store %arg4[%c0_6, %c0_7], %7 {strides = array<i32>} : memref<32x50xf32, #tpu.memory_space<vmem>>, vector<32x50xf32>,
    return
  }
  func.func @transform_0(%arg0: i32) -> (i32, i32) {
    %c0_i32 = arith.constant 0 : i32
    %c0_i32_0 = arith.constant 0 : i32
    %c0_i32_1 = arith.constant 0 : i32
    return %c0_i32, %c0_i32_0 : i32, i32
  }
  func.func @transform_1(%arg0: i32) -> (i32, i32) {
    %c0_i32 = arith.constant 0 : i32
    %c0_i32_0 = arith.constant 0 : i32
    return %c0_i32, %arg0 : i32, i32
  }
  func.func @transform_2(%arg0: i32) -> (i32, i32) {
    %c0_i32 = arith.constant 0 : i32
    %c0_i32_0 = arith.constant 0 : i32
    %c0_i32_1 = arith.constant 0 : i32
    return %c0_i32, %c0_i32_0 : i32, i32
  }
  func.func @transform_3(%arg0: i32) -> (i32, i32) {
    %c0_i32 = arith.constant 0 : i32
    %c0_i32_0 = arith.constant 0 : i32
    return %c0_i32, %arg0 : i32, i32
  }
}

module attributes {stable_mosaic.version = 11 : i64} {
  func.func @_matmul_bias_act_t_kernel(%arg0: i32, %arg1: memref<32x800xf32, #tpu.memory_space<vmem>>, %arg2: memref<800x2xf32, #tpu.memory_space<vmem>>, %arg3: memref<32x1xf32, #tpu.memory_space<vmem>>, %arg4: memref<32x2xf32, #tpu.memory_space<vmem>>) attributes {dimension_semantics = [#tpu.dimension_semantics<parallel>], iteration_bounds = array<i64: 1>, scalar_prefetch = 0 : i64, scratch_operands = 0 : i64, tpu.core_type = #tpu.core_type<tc>, window_params = [{pipeline_mode = #tpu.pipeline_mode<synchronous>, transform_indices = @transform_0, window_bounds = array<i64: 32, 800>}, {transform_indices = @transform_1, window_bounds = array<i64: 800, 2>}, {pipeline_mode = #tpu.pipeline_mode<synchronous>, transform_indices = @transform_2, window_bounds = array<i64: 32, 1>}, {transform_indices = @transform_3, window_bounds = array<i64: 32, 2>}]} {
    %c0 = arith.constant 0 : index
    %c0_0 = arith.constant 0 : index
    %0 = vector.load %arg1[%c0, %c0_0] : memref<32x800xf32, #tpu.memory_space<vmem>>, vector<32x800xf32>
    %c0_1 = arith.constant 0 : index
    %c0_2 = arith.constant 0 : index
    %1 = vector.load %arg2[%c0_1, %c0_2] : memref<800x2xf32, #tpu.memory_space<vmem>>, vector<800x2xf32>
    %cst = arith.constant dense<0.000000e+00> : vector<32x2xf32>
    %2 = tpu.matmul %0, %1, %cst {dimension_numbers = #tpu.dot_dimension_numbers<[1], [0], [0], [1], [0, 0, 1, 1], [], []>} : vector<32x800xf32>, vector<800x2xf32>, vector<32x2xf32> -> vector<32x2xf32>
    %c0_3 = arith.constant 0 : index
    %c0_4 = arith.constant 0 : index
    %3 = vector.load %arg3[%c0_3, %c0_4] : memref<32x1xf32, #tpu.memory_space<vmem>>, vector<32x1xf32>
    %4 = vector.broadcast %3 : vector<32x1xf32> to vector<32x2xf32>
    %5 = arith.addf %2, %4 : vector<32x2xf32>
    %cst_5 = arith.constant 0.000000e+00 : f32
    %6 = vector.broadcast %cst_5 : f32 to vector<32x2xf32>
    %7 = arith.maximumf %5, %6 : vector<32x2xf32>
    %c0_6 = arith.constant 0 : index
    %c0_7 = arith.constant 0 : index
    %8 = vector.load %arg4[%c0_6, %c0_7] : memref<32x2xf32, #tpu.memory_space<vmem>>, vector<32x2xf32>
    tpu.vector_store %arg4[%c0_6, %c0_7], %7 {strides = array<i32>} : memref<32x2xf32, #tpu.memory_space<vmem>>, vector<32x2xf32>,
    return
  }
  func.func @transform_0(%arg0: i32) -> (i32, i32) {
    %c0_i32 = arith.constant 0 : i32
    %c0_i32_0 = arith.constant 0 : i32
    %c0_i32_1 = arith.constant 0 : i32
    return %c0_i32, %c0_i32_0 : i32, i32
  }
  func.func @transform_1(%arg0: i32) -> (i32, i32) {
    %c0_i32 = arith.constant 0 : i32
    %c0_i32_0 = arith.constant 0 : i32
    return %c0_i32, %arg0 : i32, i32
  }
  func.func @transform_2(%arg0: i32) -> (i32, i32) {
    %c0_i32 = arith.constant 0 : i32
    %c0_i32_0 = arith.constant 0 : i32
    %c0_i32_1 = arith.constant 0 : i32
    return %c0_i32, %c0_i32_0 : i32, i32
  }
  func.func @transform_3(%arg0: i32) -> (i32, i32) {
    %c0_i32 = arith.constant 0 : i32
    %c0_i32_0 = arith.constant 0 : i32
    return %c0_i32, %arg0 : i32, i32
  }
}

module attributes {stable_mosaic.version = 11 : i64} {
  func.func @_fused_head_out_kernel(%arg0: i32, %arg1: memref<5x32xf32, #tpu.memory_space<vmem>>, %arg2: memref<32x2xf32, #tpu.memory_space<vmem>>, %arg3: memref<5x2xf32, #tpu.memory_space<vmem>>, %arg4: memref<2x2xf32, #tpu.memory_space<vmem>>, %arg5: memref<5x1xf32, #tpu.memory_space<vmem>>, %arg6: memref<5x2xf32, #tpu.memory_space<vmem>>) attributes {dimension_semantics = [#tpu.dimension_semantics<arbitrary>], iteration_bounds = array<i64: 1>, scalar_prefetch = 0 : i64, scratch_operands = 0 : i64, tpu.core_type = #tpu.core_type<tc>, window_params = [{pipeline_mode = #tpu.pipeline_mode<synchronous>, transform_indices = @transform_0, window_bounds = array<i64: 5, 32>}, {pipeline_mode = #tpu.pipeline_mode<synchronous>, transform_indices = @transform_1, window_bounds = array<i64: 32, 2>}, {pipeline_mode = #tpu.pipeline_mode<synchronous>, transform_indices = @transform_2, window_bounds = array<i64: 5, 2>}, {pipeline_mode = #tpu.pipeline_mode<synchronous>, transform_indices = @transform_3, window_bounds = array<i64: 2, 2>}, {pipeline_mode = #tpu.pipeline_mode<synchronous>, transform_indices = @transform_4, window_bounds = array<i64: 5, 1>}, {pipeline_mode = #tpu.pipeline_mode<synchronous>, transform_indices = @transform_5, window_bounds = array<i64: 5, 2>}]} {
    %c0 = arith.constant 0 : index
    %c0_0 = arith.constant 0 : index
    %0 = vector.load %arg1[%c0, %c0_0] : memref<5x32xf32, #tpu.memory_space<vmem>>, vector<5x32xf32>
    %c0_1 = arith.constant 0 : index
    %c0_2 = arith.constant 0 : index
    %1 = vector.load %arg2[%c0_1, %c0_2] : memref<32x2xf32, #tpu.memory_space<vmem>>, vector<32x2xf32>
    %cst = arith.constant dense<0.000000e+00> : vector<5x2xf32>
    %2 = tpu.matmul %0, %1, %cst {dimension_numbers = #tpu.dot_dimension_numbers<[1], [0], [0], [1], [0, 0, 1, 1], [], []>} : vector<5x32xf32>, vector<32x2xf32>, vector<5x2xf32> -> vector<5x2xf32>
    %c0_3 = arith.constant 0 : index
    %c0_4 = arith.constant 0 : index
    %3 = vector.load %arg3[%c0_3, %c0_4] : memref<5x2xf32, #tpu.memory_space<vmem>>, vector<5x2xf32>
    %c0_5 = arith.constant 0 : index
    %c0_6 = arith.constant 0 : index
    %4 = vector.load %arg4[%c0_5, %c0_6] : memref<2x2xf32, #tpu.memory_space<vmem>>, vector<2x2xf32>
    %cst_7 = arith.constant dense<0.000000e+00> : vector<5x2xf32>
    %5 = tpu.matmul %3, %4, %cst_7 {dimension_numbers = #tpu.dot_dimension_numbers<[1], [0], [0], [1], [0, 0, 1, 1], [], []>} : vector<5x2xf32>, vector<2x2xf32>, vector<5x2xf32> -> vector<5x2xf32>
    %6 = arith.addf %2, %5 : vector<5x2xf32>
    %c0_8 = arith.constant 0 : index
    %c0_9 = arith.constant 0 : index
    %7 = vector.load %arg5[%c0_8, %c0_9] : memref<5x1xf32, #tpu.memory_space<vmem>>, vector<5x1xf32>
    %8 = vector.broadcast %7 : vector<5x1xf32> to vector<5x2xf32>
    %9 = arith.addf %6, %8 : vector<5x2xf32>
    %c0_10 = arith.constant 0 : index
    %c0_11 = arith.constant 0 : index
    %10 = vector.load %arg6[%c0_10, %c0_11] : memref<5x2xf32, #tpu.memory_space<vmem>>, vector<5x2xf32>
    tpu.vector_store %arg6[%c0_10, %c0_11], %9 {strides = array<i32>} : memref<5x2xf32, #tpu.memory_space<vmem>>, vector<5x2xf32>,
    return
  }
  func.func @transform_0(%arg0: i32) -> (i32, i32) {
    %c0_i32 = arith.constant 0 : i32
    %c0_i32_0 = arith.constant 0 : i32
    %c0_i32_1 = arith.constant 0 : i32
    return %c0_i32, %c0_i32_0 : i32, i32
  }
  func.func @transform_1(%arg0: i32) -> (i32, i32) {
    %c0_i32 = arith.constant 0 : i32
    %c0_i32_0 = arith.constant 0 : i32
    %c0_i32_1 = arith.constant 0 : i32
    return %c0_i32, %c0_i32_0 : i32, i32
  }
  func.func @transform_2(%arg0: i32) -> (i32, i32) {
    %c0_i32 = arith.constant 0 : i32
    %c0_i32_0 = arith.constant 0 : i32
    %c0_i32_1 = arith.constant 0 : i32
    return %c0_i32, %c0_i32_0 : i32, i32
  }
  func.func @transform_3(%arg0: i32) -> (i32, i32) {
    %c0_i32 = arith.constant 0 : i32
    %c0_i32_0 = arith.constant 0 : i32
    %c0_i32_1 = arith.constant 0 : i32
    return %c0_i32, %c0_i32_0 : i32, i32
  }
  func.func @transform_4(%arg0: i32) -> (i32, i32) {
    %c0_i32 = arith.constant 0 : i32
    %c0_i32_0 = arith.constant 0 : i32
    %c0_i32_1 = arith.constant 0 : i32
    return %c0_i32, %c0_i32_0 : i32, i32
  }
  func.func @transform_5(%arg0: i32) -> (i32, i32) {
    %c0_i32 = arith.constant 0 : i32
    %c0_i32_0 = arith.constant 0 : i32
    %c0_i32_1 = arith.constant 0 : i32
    return %c0_i32, %c0_i32_0 : i32, i32
  }
}

</mosaic_0001>

<bundles_post_ra>
// kernel: dqn_forward.4
= control target key start
LH: loop header
LB: loop body
LE: loop exit
PB: predicated region body
PF: predicated region fallthrough
CT: control target
= control target key end

     0   :  { %s597_s12 = smov 0   ;;  %s599_s13 = smov 0   ;;  %s757_s0 = inlined_call_operand.vmem [shape: f32[16,100], index: 0, kind: input, shape index: {}]   ;;  %s758_s1 = inlined_call_operand.vmem [shape: f32[100,392], index: 1, kind: input, shape index: {}]   ;;  %s759_s2 = inlined_call_operand.vmem [shape: f32[16,1], index: 2, kind: input, shape index: {}]   ;;  %s760_s3 = inlined_call_operand.vmem [shape: f32[16,392], index: 3, kind: output, shape index: {}]  }
   0x1   :  { %s601_s14 = smov 0  }
   0x2 LB: > { %s465_s15 = sadd.s32 4294967295, %s573_s14   ;;  %s614_s16 = sadd.s32 1, %s573_s14   ;;  %s573_s14 = sphi %s601_s14, %s764_s14   ;;  %s569_s13 = sphi %s599_s13, %s763_s13   ;;  %s565_s12 = sphi %s597_s12, %s762_s12  }
   0x3   : > { %s38_s17 = ssub.s32 %s573_s14, %s614_s16  ;;  %s41_s18 = sadd.s32 1, %s569_s13 }
   0x4   : > { %p39_p0 = scmp.eq.s32.totalorder %s38_s17, 0  ;;  %p48_p1 = scmp.ne.s32.totalorder %s569_s13, %s565_s12 }
   0x5   : > { %p49_p2 = scmp.eq.s32.totalorder %s573_s14, 0  ;;  %p99_p3 = scmp.eq.s32.totalorder %s465_s15, 1 }
   0x6   : > { %s625_s19 = scalar_select %p39_p0, %s569_s13, %s41_s18  }
   0x7   : > { %p50_p4 = por %p49_p2, %p48_p1  ;;  %p627_p5 = por %p99_p3, %p48_p1 }
   0x8   : > { %p468_p6 = scmp.ge.s32.totalorder %s573_s14, 2 }
   0xa   : > { %127 = sbr.rel (%p468_p6) target bundleno = 34 (0x22), region = 24 }
  0x11   : > { %130 = sbr.rel (!%p50_p4) target bundleno = 34 (0x22), region = 28  ;;  %s132_s21 = sand.u32 (%p50_p4), 1, %s569_s13  }
  0x12   : > { %s482_s22 = sshll.u32 (%p50_p4), %s573_s14, 4  ;;  %s522_s23 = smul.u32 (%p50_p4), 208, %s132_s21 }
  0x13   : > { %s637_s26 = scalar_lea.vmem (%p50_p4), %s758_s1, %s482_s22 }
  0x14   : > { %v150_v0 = vld [vmem:[%s637_s26] sm:$0xff] (%p50_p4)  ;;  %v152_v1 = vld [vmem:[%s637_s26 + $0x8] sm:$0xff] (%p50_p4)  ;;  %s645_s27 = scalar_lea.vmem (%p50_p4), [#allocation2], %s522_s23 }
  0x15   : > { %v154_v2 = vld [vmem:[%s637_s26 + $0x20] sm:$0xff] (%p50_p4)  ;;  %v156_v3 = vld [vmem:[%s637_s26 + $0x28] sm:$0xff] (%p50_p4)  ;;  %151 = vst [vmem:[%s645_s27] sm:$0xff] (%p50_p4), %v150_v0  ;;  %153 = vst [vmem:[%s645_s27 + $0x8] sm:$0xff] (%p50_p4), %v152_v1 }
  0x16   : > { %v158_v4 = vld [vmem:[%s637_s26 + $0x40] sm:$0xff] (%p50_p4)  ;;  %v160_v5 = vld [vmem:[%s637_s26 + $0x48] sm:$0xff] (%p50_p4)  ;;  %155 = vst [vmem:[%s645_s27 + $0x10] sm:$0xff] (%p50_p4), %v154_v2  ;;  %157 = vst [vmem:[%s645_s27 + $0x18] sm:$0xff] (%p50_p4), %v156_v3 }
  0x17   : > { %159 = vst [vmem:[%s645_s27 + $0x20] sm:$0xff] (%p50_p4), %v158_v4  ;;  %161 = vst [vmem:[%s645_s27 + $0x28] sm:$0xff] (%p50_p4), %v160_v5  ;;  %v162_v6 = vld [vmem:[%s637_s26 + $0x60] sm:$0xff] (%p50_p4)  ;;  %v164_v7 = vld [vmem:[%s637_s26 + $0x68] sm:$0xff] (%p50_p4) }
  0x18   : > { %v166_v8 = vld [vmem:[%s637_s26 + $0x80] sm:$0xff]  ;;  %163 = vst [vmem:[%s645_s27 + $0x30] sm:$0xff] %v162_v6  ;;  %165 = vst [vmem:[%s645_s27 + $0x38] sm:$0xff] %v164_v7  ;;  %v168_v9 = vld [vmem:[%s637_s26 + $0x88] sm:$0xff] }
  0x19   : > { %167 = vst [vmem:[%s645_s27 + $0x40] sm:$0xff] %v166_v8  ;;  %v170_v10 = vld [vmem:[%s637_s26 + $0xa0] sm:$0xff]  ;;  %v172_v11 = vld [vmem:[%s637_s26 + $0xa8] sm:$0xff]  ;;  %169 = vst [vmem:[%s645_s27 + $0x48] sm:$0xff] %v168_v9 }
  0x1a   : > { %171 = vst [vmem:[%s645_s27 + $0x50] sm:$0xff] %v170_v10  ;;  %173 = vst [vmem:[%s645_s27 + $0x58] sm:$0xff] %v172_v11  ;;  %v174_v12 = vld [vmem:[%s637_s26 + $0xc0] sm:$0xff]  ;;  %v176_v13 = vld [vmem:[%s637_s26 + $0xc8] sm:$0xff] }
  0x1b   : > { %v178_v14 = vld [vmem:[%s637_s26 + $0xe0] sm:$0xff]  ;;  %175 = vst [vmem:[%s645_s27 + $0x60] sm:$0xff] %v174_v12  ;;  %177 = vst [vmem:[%s645_s27 + $0x68] sm:$0xff] %v176_v13  ;;  %v180_v15 = vld [vmem:[%s637_s26 + $0xe8] sm:$0xff] }
  0x1c   : > { %179 = vst [vmem:[%s645_s27 + $0x70] sm:$0xff] %v178_v14  ;;  %v182_v16 = vld [vmem:[%s637_s26 + $0x100] sm:$0xff]  ;;  %v184_v17 = vld [vmem:[%s637_s26 + $0x108] sm:$0xff]  ;;  %181 = vst [vmem:[%s645_s27 + $0x78] sm:$0xff] %v180_v15 }
  0x1d   : > { %183 = vst [vmem:[%s645_s27 + $0x80] sm:$0xff] %v182_v16  ;;  %185 = vst [vmem:[%s645_s27 + $0x88] sm:$0xff] %v184_v17  ;;  %v186_v18 = vld [vmem:[%s637_s26 + $0x120] sm:$0xff]  ;;  %v188_v19 = vld [vmem:[%s637_s26 + $0x128] sm:$0xff] }
  0x1e   : > { %v190_v20 = vld [vmem:[%s637_s26 + $0x140] sm:$0xff]  ;;  %187 = vst [vmem:[%s645_s27 + $0x90] sm:$0xff] %v186_v18  ;;  %189 = vst [vmem:[%s645_s27 + $0x98] sm:$0xff] %v188_v19  ;;  %v192_v21 = vld [vmem:[%s637_s26 + $0x148] sm:$0xff] }
  0x1f   : > { %191 = vst [vmem:[%s645_s27 + $0xa0] sm:$0xff] %v190_v20  ;;  %v194_v22 = vld [vmem:[%s637_s26 + $0x160] sm:$0xff]  ;;  %v196_v23 = vld [vmem:[%s637_s26 + $0x168] sm:$0xff]  ;;  %193 = vst [vmem:[%s645_s27 + $0xa8] sm:$0xff] %v192_v21 }
  0x20   : > { %195 = vst [vmem:[%s645_s27 + $0xb0] sm:$0xff] %v194_v22  ;;  %197 = vst [vmem:[%s645_s27 + $0xb8] sm:$0xff] %v196_v23  ;;  %v198_v24 = vld [vmem:[%s637_s26 + $0x180] sm:$0xff]  ;;  %v200_v25 = vld [vmem:[%s637_s26 + $0x188] sm:$0xff] }
  0x21   : > { %199 = vst [vmem:[%s645_s27 + $0xc0] sm:$0xff] %v198_v24  ;;  %201 = vst [vmem:[%s645_s27 + $0xc8] sm:$0xff] %v200_v25 }
  0x22 PF: > { %p471_p7 = scmp.ge.s32.totalorder %s573_s14, 1  ;;  %p206_p8 = scmp.lt.s32.totalorder %s573_s14, 3 }
  0x24   : > { %p207_p9 = pnand %p471_p7, %p206_p8 }
  0x25   : > { %s213_s28 = sand.u32 (!%p207_p9), 1, %s565_s12   ;;  %v575_v26 = vmov (!%p207_p9), 0.0   ;;  %v265_v27 = vld [vmem:[%s759_s2] sm:$0xff] (!%p207_p9)  ;;  %v576_v28 = vmov (!%p207_p9), 0   ;;  %v266_v42 = vld [vmem:[%s759_s2 + $0x8] sm:$0xff] (!%p207_p9)  ;;  %vm284_vm0 = vcmask (!%p207_p9), 1043456  }
  0x26   : > { %210 = sbr.rel (%p207_p9) target bundleno = 297 (0x129), region = 51  ;;  %355 = vmatprep.mubr.f32.mxu0 (!%p207_p9), %v575_v26  ;;  %361 = vmatprep.mubr.f32.mxu1 (!%p207_p9), %v575_v26  ;;  %v237_v4 = vld [vmem:[%s757_s0] sm:$0xff] (!%p207_p9)  ;;  %vm277_vm1 = vcmask (!%p207_p9), 818176   ;;  %v238_v5 = vld [vmem:[%s757_s0 + $0x8] sm:$0xff] (!%p207_p9)  ;;  %s472_s17 = sshll.u32 (!%p207_p9), %s213_s28, 5 }
  0x27   : > { %s523_s29 = smul.u32 (!%p207_p9), 208, %s213_s28  ;;  %550 = vset.pattern.permute.xlu0 (!%p207_p9), %v576_v28  ;;  %s234_s18 = scalar_lea.vmem (!%p207_p9), [#allocation3], %s472_s17 }
  0x28   : > { %269 = vperm.xlu0 (!%p207_p9), %550, %v265_v27  }
  0x29   : > { %s701_s5 = scalar_lea.vmem (!%p207_p9), [#allocation2], %s523_s29 }
  0x2a   : > { %v240_v29 = vld [vmem:[%s701_s5 + $0x8] sm:$0xff] (!%p207_p9)  ;;  %v242_v30 = vld [vmem:[%s701_s5 + $0x18] sm:$0xff] (!%p207_p9)  ;;  %v239_v31 = vld [vmem:[%s701_s5] sm:$0xff] (!%p207_p9) }
  0x2b   : > { %v484_v32 = vpack.c.bf16 (!%p207_p9), %v242_v30, %v240_v29  ;;  %v241_v33 = vld [vmem:[%s701_s5 + $0x10] sm:$0xff] (!%p207_p9)  ;;  %v244_v34 = vld [vmem:[%s701_s5 + $0x28] sm:$0xff] (!%p207_p9)  ;;  %v246_v35 = vld [vmem:[%s701_s5 + $0x38] sm:$0xff] (!%p207_p9) }
  0x2c   : > { %v486_v36 = vpack.c.bf16 (!%p207_p9), %v241_v33, %v239_v31  ;;  %v488_v37 = vpack.c.bf16 (!%p207_p9), %v246_v35, %v244_v34  ;;  %v243_v38 = vld [vmem:[%s701_s5 + $0x20] sm:$0xff] (!%p207_p9)  ;;  %v245_v39 = vld [vmem:[%s701_s5 + $0x30] sm:$0xff] (!%p207_p9)  ;;  %v248_v40 = vld [vmem:[%s701_s5 + $0x48] sm:$0xff] (!%p207_p9)  ;;  %274 = vperm.xlu0 (!%p207_p9), %550, %v266_v42  }
  0x2d   : > { %485 = vmatprep.subr.bf16.mxu0 %v484_v32  ;;  %508 = vmatprep.subr.bf16.mxu1 %v484_v32  ;;  %v250_v41 = vld [vmem:[%s701_s5 + $0x58] sm:$0xff]  ;;  %v490_v43 = vpack.c.bf16 %v245_v39, %v243_v38  ;;  %v247_v45 = vld [vmem:[%s701_s5 + $0x40] sm:$0xff]  ;;  %v249_v46 = vld [vmem:[%s701_s5 + $0x50] sm:$0xff]  ;;  %s483_s12 = sshll.u32 (%p627_p5), %s465_s15, 4 }
  0x2e   : > { %487 = vmatpush1.bf16.msra.mxu0 %v486_v36  ;;  %515 = vmatpush1.bf16.msra.mxu1 %v486_v36  ;;  %v492_v44 = vpack.c.bf16 %v250_v41, %v248_v40  ;;  %v252_v47 = vld [vmem:[%s701_s5 + $0x68] sm:$0xff]  ;;  %v254_v48 = vld [vmem:[%s701_s5 + $0x78] sm:$0xff]  ;;  %v494_v49 = vpack.c.bf16 %v249_v46, %v247_v45  ;;  %v251_v51 = vld [vmem:[%s701_s5 + $0x60] sm:$0xff]  ;;  %s385_s23 = scalar_lea.vmem (%p627_p5), %s760_s3, %s483_s12 }
  0x2f   : > { %489 = vmatprep.subr.bf16.mxu0 %v488_v37  ;;  %509 = vmatprep.subr.bf16.mxu1 %v488_v37  ;;  %v496_v50 = vpack.c.bf16 %v254_v48, %v252_v47  ;;  %v253_v52 = vld [vmem:[%s701_s5 + $0x70] sm:$0xff]  ;;  %v256_v53 = vld [vmem:[%s701_s5 + $0x88] sm:$0xff]  ;;  %v258_v54 = vld [vmem:[%s701_s5 + $0x98] sm:$0xff] }
  0x30   : > { %v498_v55 = vpack.c.bf16 %v253_v52, %v251_v51  ;;  %v500_v56 = vpack.c.bf16 %v258_v54, %v256_v53  ;;  %v255_v57 = vld [vmem:[%s701_s5 + $0x80] sm:$0xff]  ;;  %v257_v58 = vld [vmem:[%s701_s5 + $0x90] sm:$0xff]  ;;  %v260_v59 = vld [vmem:[%s701_s5 + $0xa8] sm:$0xff] }
  0x31   : > { %v262_v60 = vld [vmem:[%s701_s5 + $0xb8] sm:$0xff]  ;;  %v502_v61 = vpack.c.bf16 %v257_v58, %v255_v57  ;;  %v259_v63 = vld [vmem:[%s701_s5 + $0xa0] sm:$0xff]  ;;  %v261_v0 = vld [vmem:[%s701_s5 + $0xb0] sm:$0xff] }
  0x32   : > { %491 = vmatpush1.bf16.msra.mxu0 %v490_v43  ;;  %516 = vmatpush1.bf16.msra.mxu1 %v490_v43  ;;  %v504_v62 = vpack.c.bf16 %v262_v60, %v260_v59  ;;  %v506_v1 = vpack.c.bf16 %v261_v0, %v259_v63  ;;  %v264_v2 = vld [vmem:[%s701_s5 + $0xc8] sm:$0xf]  ;;  %v263_v3 = vld [vmem:[%s701_s5 + $0xc0] sm:$0xf] }
  0x33   : > { %493 = vmatprep.subr.bf16.mxu0 %v492_v44  ;;  %510 = vmatprep.subr.bf16.mxu1 %v492_v44 }
  0x36   : > { %495 = vmatpush1.bf16.msra.mxu0 %v494_v49  ;;  %517 = vmatpush1.bf16.msra.mxu1 %v494_v49 }
  0x37   : > { %497 = vmatprep.subr.bf16.mxu0 %v496_v50  ;;  %511 = vmatprep.subr.bf16.mxu1 %v496_v50 }
  0x3a   : > { %499 = vmatpush1.bf16.msra.mxu0 %v498_v55  ;;  %518 = vmatpush1.bf16.msra.mxu1 %v498_v55 }
  0x3b   : > { %501 = vmatprep.subr.bf16.mxu0 %v500_v56  ;;  %512 = vmatprep.subr.bf16.mxu1 %v500_v56 }
  0x3e   : > { %503 = vmatpush1.bf16.msra.mxu0 %v502_v61  ;;  %519 = vmatpush1.bf16.msra.mxu1 %v502_v61 }
  0x3f   : > { %505 = vmatprep.subr.bf16.mxu0 %v504_v62  ;;  %513 = vmatprep.subr.bf16.mxu1 %v504_v62 }
  0x42   : > { %507 = vmatpush1.bf16.msra.mxu0 %v506_v1  ;;  %520 = vmatpush1.bf16.msra.mxu1 %v506_v1 }
  0x43   : > { %473 = vmatprep.subr.msk.mxu0 %vm284_vm0, %v264_v2  ;;  %514 = vmatprep.subr.msk.mxu1 %vm284_vm0, %v264_v2 }
  0x46   : > { %474 = vmatpush1.msk.msra.mxu0 %vm284_vm0, %v263_v3  ;;  %521 = vmatpush1.msk.msra.mxu1 %vm284_vm0, %v263_v3 }
  0x47   : > { %475 = vmatmul.mubr.msk.f32.vlgmr.msra.gmra.mrb[0].mxu0 %vm277_vm1, %v237_v4  ;;  %476 = vmatmul.mubr.msk.f32.vlgmr.msra.gmra.mrb[0].mxu1 %vm277_vm1, %v238_v5 }
  0xa7   : > { %v270_v6 = vpop.permute.xlu0 %269 }
  0xab   : > { %v275_v7 = vpop.permute.xlu0 %274 }
 0x11a   : > { %v357_v8 = vpop.f32.mrb[0].mxu0  ;;  %v363_v9 = vpop.f32.mrb[0].mxu1  ;;  %382 = sbr.rel (!%p627_p5) target bundleno = 297 (0x129), region = 59 }
 0x11b   : > { %v358_v10 = vadd.f32 %v357_v8, %v270_v6  ;;  %v364_v11 = vadd.f32 %v363_v9, %v275_v7  ;;  %v359_v12 = vpop.f32.mrb[1].mxu0  ;;  %v365_v13 = vpop.f32.mrb[1].mxu1 }
 0x11c   : > { %v360_v14 = vadd.f32 %v359_v12, %v270_v6  ;;  %v366_v15 = vadd.f32 %v365_v13, %v275_v7 }
 0x11d   : > { %v368_v16 = vmax.f32 %v358_v10, 0.0  ;;  %v370_v17 = vmax.f32 %v364_v11, 0.0 }
 0x11e   : > { %v369_v18 = vmax.f32 %v360_v14, 0.0  ;;  %v371_v19 = vmax.f32 %v366_v15, 0.0 }
 0x11f   : > { %372 = vst [vmem:[%s234_s18] sm:$0xff] %v368_v16  ;;  %374 = vst [vmem:[%s234_s18 + $0x10] sm:$0xff] %v370_v17 }
 0x120   : > { %373 = vst [vmem:[%s234_s18 + $0x8] sm:$0xff] %v369_v18  ;;  %375 = vst [vmem:[%s234_s18 + $0x18] sm:$0xff] %v371_v19 }
 0x126   : > { %v398_v20 = vld [vmem:[%s234_s18] sm:$0xff]  ;;  %v402_v22 = vld [vmem:[%s234_s18 + $0x10] sm:$0xff] }
 0x127   : > { %v400_v21 = vld [vmem:[%s234_s18 + $0x8] sm:$0xff]  ;;  %v404_v23 = vld [vmem:[%s234_s18 + $0x18] sm:$0xff]  ;;  %399 = vst [vmem:[%s385_s23] sm:$0xff] %v398_v20  ;;  %403 = vst [vmem:[%s385_s23 + $0x20] sm:$0xff] %v402_v22 }
 0x128   : > { %401 = vst [vmem:[%s385_s23 + $0x8] sm:$0xff] %v400_v21  ;;  %405 = vst [vmem:[%s385_s23 + $0x28] sm:$0xff] %v404_v23 }
 0x129 PF: > { %p10_p10 = scmp.ge.s32.totalorder %s614_s16, 4   ;;  %s762_s12 = smov %s569_s13 }
 0x12a   : > { %s763_s13 = smov %s625_s19  ;;  %s764_s14 = smov %s614_s16 }
 0x12b   :  { %12 = sbr.rel (!%p10_p10) target bundleno = 2 (0x2), region = 113 }

// kernel: dqn_forward.5
= control target key start
LH: loop header
LB: loop body
LE: loop exit
PB: predicated region body
PF: predicated region fallthrough
CT: control target
= control target key end

     0   :  { %v411_v2 = vmov 0.0|0.0   ;;  %v412_v4 = vmov 0   ;;  %vm104_vm0 = vcmask 130048   ;;  %vm291_vm1 = vcmask 408576   ;;  %s672_s1 = inlined_call_operand.vmem [shape: f32[400,50], index: 1, kind: input, shape index: {}]   ;;  %s673_s0 = inlined_call_operand.vmem [shape: f32[32,400], index: 0, kind: input, shape index: {}]   ;;  %s674_s2 = inlined_call_operand.vmem [shape: f32[32,1], index: 2, kind: input, shape index: {}]   ;;  %s675_s3 = inlined_call_operand.vmem [shape: f32[32,50], index: 3, kind: output, shape index: {}]  }
   0x1   :  { %v46_v0 = vld [vmem:[%s672_s1 + $0x80] sm:$0xff]  ;;  %v47_v1 = vld [vmem:[%s672_s1 + $0x88] sm:$0xff]  ;;  %380 = vmatprep.subr.bf16.mxu1 %v411_v2  ;;  %409 = vset.pattern.permute.xlu0 %v412_v4  ;;  %v48_v11 = vld [vmem:[%s672_s1 + $0x90] sm:$0xff] }
   0x2   :  { %v30_v3 = vld [vmem:[%s672_s1] sm:$0xff]  ;;  %v348_v5 = vpack.c.bf16 %v47_v1, %v46_v0  ;;  %v31_v6 = vld [vmem:[%s672_s1 + $0x8] sm:$0xff]  ;;  %410 = vset.pattern.permute.xlu1 %v412_v4  ;;  %v49_v12 = vld [vmem:[%s672_s1 + $0x98] sm:$0xff] }
   0x3   :  { %v62_v7 = vld [vmem:[%s672_s1 + $0x100] sm:$0xff]  ;;  %v63_v8 = vld [vmem:[%s672_s1 + $0x108] sm:$0xff]  ;;  %v350_v9 = vpack.c.bf16 %v31_v6, %v30_v3  ;;  %v32_v13 = vld [vmem:[%s672_s1 + $0x10] sm:$0xff]  ;;  %v352_v14 = vpack.c.bf16 %v49_v12, %v48_v11 }
   0x4   :  { %v381_v10 = vpack.c.bf16 %v63_v8, %v62_v7  ;;  %349 = vmatprep.subr.bf16.mxu0 %v348_v5  ;;  %v33_v15 = vld [vmem:[%s672_s1 + $0x18] sm:$0xff]  ;;  %v64_v16 = vld [vmem:[%s672_s1 + $0x110] sm:$0xff]  ;;  %v50_v20 = vld [vmem:[%s672_s1 + $0xa0] sm:$0xff] }
   0x5   :  { %v65_v17 = vld [vmem:[%s672_s1 + $0x118] sm:$0xff]  ;;  %351 = vmatpush3.bf16.msra.mxu0 %v350_v9  ;;  %v354_v18 = vpack.c.bf16 %v33_v15, %v32_v13  ;;  %v51_v21 = vld [vmem:[%s672_s1 + $0xa8] sm:$0xff]  ;;  %v34_v22 = vld [vmem:[%s672_s1 + $0x20] sm:$0xff] }
   0x6   :  { %382 = vmatpush1.bf16.msra.mxu1 %v381_v10  ;;  %v384_v19 = vpack.c.bf16 %v65_v17, %v64_v16  ;;  %353 = vmatprep.subr.bf16.mxu0 %v352_v14  ;;  %v356_v23 = vpack.c.bf16 %v51_v21, %v50_v20  ;;  %v35_v24 = vld [vmem:[%s672_s1 + $0x28] sm:$0xff]  ;;  %v66_v25 = vld [vmem:[%s672_s1 + $0x120] sm:$0xff]  ;;  %v52_v27 = vld [vmem:[%s672_s1 + $0xb0] sm:$0xff] }
   0x7   :  { %383 = vmatprep.subr.bf16.mxu1 %v411_v2  ;;  %v67_v26 = vld [vmem:[%s672_s1 + $0x128] sm:$0xff]  ;;  %v53_v28 = vld [vmem:[%s672_s1 + $0xb8] sm:$0xff]  ;;  %v358_v29 = vpack.c.bf16 %v35_v24, %v34_v22  ;;  %v36_v31 = vld [vmem:[%s672_s1 + $0x30] sm:$0xff] }
   0x8   :  { %v387_v30 = vpack.c.bf16 %v67_v26, %v66_v25  ;;  %v360_v32 = vpack.c.bf16 %v53_v28, %v52_v27  ;;  %v37_v33 = vld [vmem:[%s672_s1 + $0x38] sm:$0xff]  ;;  %v68_v34 = vld [vmem:[%s672_s1 + $0x130] sm:$0xff]  ;;  %v54_v36 = vld [vmem:[%s672_s1 + $0xc0] sm:$0xff] }
   0x9   :  { %355 = vmatpush3.bf16.msra.mxu0 %v354_v18  ;;  %v69_v35 = vld [vmem:[%s672_s1 + $0x138] sm:$0xff]  ;;  %v55_v37 = vld [vmem:[%s672_s1 + $0xc8] sm:$0xff]  ;;  %v362_v38 = vpack.c.bf16 %v37_v33, %v36_v31  ;;  %v38_v40 = vld [vmem:[%s672_s1 + $0x40] sm:$0xff] }
   0xa   :  { %385 = vmatpush1.bf16.msra.mxu1 %v384_v19  ;;  %357 = vmatprep.subr.bf16.mxu0 %v356_v23  ;;  %v390_v39 = vpack.c.bf16 %v69_v35, %v68_v34  ;;  %v364_v41 = vpack.c.bf16 %v55_v37, %v54_v36  ;;  %v39_v42 = vld [vmem:[%s672_s1 + $0x48] sm:$0xff]  ;;  %v70_v43 = vld [vmem:[%s672_s1 + $0x140] sm:$0xff]  ;;  %v56_v45 = vld [vmem:[%s672_s1 + $0xd0] sm:$0xff] }
   0xb   :  { %386 = vmatprep.subr.bf16.mxu1 %v411_v2  ;;  %v71_v44 = vld [vmem:[%s672_s1 + $0x148] sm:$0xff]  ;;  %v57_v46 = vld [vmem:[%s672_s1 + $0xd8] sm:$0xff]  ;;  %v366_v47 = vpack.c.bf16 %v39_v42, %v38_v40  ;;  %v40_v49 = vld [vmem:[%s672_s1 + $0x50] sm:$0xff] }
   0xc   :  { %v393_v48 = vpack.c.bf16 %v71_v44, %v70_v43  ;;  %v41_v50 = vld [vmem:[%s672_s1 + $0x58] sm:$0xff]  ;;  %v15_v51 = vld [vmem:[%s673_s0 + $0x8] sm:$0xff]  ;;  %v368_v52 = vpack.c.bf16 %v57_v46, %v56_v45  ;;  %v72_v53 = vld [vmem:[%s672_s1 + $0x150] sm:$0xff] }
   0xd   :  { %359 = vmatpush3.bf16.msra.mxu0 %v358_v29  ;;  %v73_v54 = vld [vmem:[%s672_s1 + $0x158] sm:$0xff]  ;;  %v58_v56 = vld [vmem:[%s672_s1 + $0xe0] sm:$0xff]  ;;  %v59_v57 = vld [vmem:[%s672_s1 + $0xe8] sm:$0xff]  ;;  %181 = vmatprep.mubr.f32.mxu0 %v15_v51  ;;  %v370_v58 = vpack.c.bf16 %v41_v50, %v40_v49 }
   0xe   :  { %388 = vmatpush1.bf16.msra.mxu1 %v387_v30  ;;  %361 = vmatprep.subr.bf16.mxu0 %v360_v32  ;;  %v17_v55 = vld [vmem:[%s673_s0 + $0x18] sm:$0xff]  ;;  %v396_v59 = vpack.c.bf16 %v73_v54, %v72_v53  ;;  %v42_v60 = vld [vmem:[%s672_s1 + $0x60] sm:$0xff]  ;;  %v43_v61 = vld [vmem:[%s672_s1 + $0x68] sm:$0xff]  ;;  %v372_v62 = vpack.c.bf16 %v59_v57, %v58_v56 }
   0xf   :  { %389 = vmatprep.subr.bf16.mxu1 %v411_v2  ;;  %300 = vmatprep.mubr.msk.f32.mxu1 %vm104_vm0, %v17_v55  ;;  %v74_v63 = vld [vmem:[%s672_s1 + $0x160] sm:$0xff]  ;;  %v75_v0 = vld [vmem:[%s672_s1 + $0x168] sm:$0xff]  ;;  %v60_v1 = vld [vmem:[%s672_s1 + $0xf0] sm:$0xff]  ;;  %v374_v6 = vpack.c.bf16 %v43_v61, %v42_v60 }
  0x10   :  { %v61_v3 = vld [vmem:[%s672_s1 + $0xf8] sm:$0xff]  ;;  %v80_v4 = vld [vmem:[%s674_s2] sm:$0xff]  ;;  %v82_v5 = vld [vmem:[%s674_s2 + $0x10] sm:$0xff]  ;;  %v399_v7 = vpack.c.bf16 %v75_v0, %v74_v63 }
  0x11   :  { %363 = vmatpush3.bf16.msra.mxu0 %v362_v38  ;;  %86 = vperm.xlu0 %409, %v80_v4   ;;  %v44_v8 = vld [vmem:[%s672_s1 + $0x70] sm:$0xff]  ;;  %v81_v9 = vld [vmem:[%s674_s2 + $0x8] sm:$0xff]  ;;  %v83_v10 = vld [vmem:[%s674_s2 + $0x18] sm:$0xff]  ;;  %v376_v11 = vpack.c.bf16 %v61_v3, %v60_v1 }
  0x12   :  { %391 = vmatpush1.bf16.msra.mxu1 %v390_v39  ;;  %365 = vmatprep.subr.bf16.mxu0 %v364_v41  ;;  %v45_v12 = vld [vmem:[%s672_s1 + $0x78] sm:$0xff]  ;;  %v76_v13 = vld [vmem:[%s672_s1 + $0x170] sm:$0xff]  ;;  %v78_v17 = vld [vmem:[%s672_s1 + $0x180] sm:$0xff] }
  0x13   :  { %392 = vmatprep.subr.bf16.mxu1 %v411_v2  ;;  %96 = vperm.xlu1 %410, %v82_v5   ;;  %v77_v14 = vld [vmem:[%s672_s1 + $0x178] sm:$0xff]  ;;  %v378_v15 = vpack.c.bf16 %v45_v12, %v44_v8  ;;  %v79_v18 = vld [vmem:[%s672_s1 + $0x188] sm:$0xff]  ;;  %v14_v19 = vld [vmem:[%s673_s0] sm:$0xff] }
  0x14   :  { %v402_v16 = vpack.c.bf16 %v77_v14, %v76_v13  ;;  %v405_v20 = vpack.c.bf16 %v79_v18, %v78_v17  ;;  %v19_v21 = vld [vmem:[%s673_s0 + $0x28] sm:$0xff]  ;;  %v18_v22 = vld [vmem:[%s673_s0 + $0x20] sm:$0xff]  ;;  %v16_v23 = vld [vmem:[%s673_s0 + $0x10] sm:$0xff] }
  0x15   :  { %367 = vmatpush3.bf16.msra.mxu0 %v366_v47  ;;  %91 = vperm.xlu0 %409, %v81_v9   ;;  %v23_v24 = vld [vmem:[%s673_s0 + $0x48] sm:$0xff]  ;;  %v22_v25 = vld [vmem:[%s673_s0 + $0x40] sm:$0xff]  ;;  %v20_v26 = vld [vmem:[%s673_s0 + $0x30] sm:$0xff] }
  0x16   :  { %394 = vmatpush1.bf16.msra.mxu1 %v393_v48  ;;  %369 = vmatprep.subr.bf16.mxu0 %v368_v52  ;;  %v27_v27 = vld [vmem:[%s673_s0 + $0x68] sm:$0xff]  ;;  %v25_v28 = vld [vmem:[%s673_s0 + $0x58] sm:$0xff]  ;;  %v26_v29 = vld [vmem:[%s673_s0 + $0x60] sm:$0xff] }
  0x17   :  { %395 = vmatprep.subr.bf16.mxu1 %v411_v2  ;;  %101 = vperm.xlu1 %410, %v83_v10   ;;  %v24_v30 = vld [vmem:[%s673_s0 + $0x50] sm:$0xff]  ;;  %v29_v31 = vld [vmem:[%s673_s0 + $0x78] sm:$0xff] }
  0x18   :  { %v28_v32 = vld [vmem:[%s673_s0 + $0x70] sm:$0xff] }
  0x19   :  { %371 = vmatpush3.bf16.msra.mxu0 %v370_v58 }
  0x1a   :  { %397 = vmatpush1.bf16.msra.mxu1 %v396_v59  ;;  %373 = vmatprep.subr.bf16.mxu0 %v372_v62 }
  0x1b   :  { %398 = vmatprep.subr.bf16.mxu1 %v411_v2 }
  0x1d   :  { %375 = vmatpush3.bf16.msra.mxu0 %v374_v6 }
  0x1e   :  { %400 = vmatpush1.bf16.msra.mxu1 %v399_v7  ;;  %377 = vmatprep.subr.bf16.mxu0 %v376_v11 }
  0x1f   :  { %401 = vmatprep.subr.bf16.mxu1 %v411_v2 }
  0x21   :  { %379 = vmatpush3.bf16.msra.mxu0 %v378_v15 }
  0x22   :  { %403 = vmatpush1.bf16.msra.mxu1 %v402_v16 }
  0x23   :  { %404 = vmatprep.subr.bf16.mxu1 %v411_v2  ;;  %v21_v2 = vld [vmem:[%s673_s0 + $0x38] sm:$0xff] }
  0x24   :  { %182 = vmatmul.mubr.f32.vlgmr.msra.gmra.mrb[0].mxu0 %v14_v19 }
  0x25   :  { %186 = vmatprep.mubr.f32.mxu0 %v19_v21 }
  0x26   :  { %406 = vmatpush1.bf16.msra.mxu1 %v405_v20 }
  0x28   :  { %187 = vmatmul.mubr.f32.gmra.mrb[2].mxu0 %v18_v22 }
  0x29   :  { %267 = vmatmul.mubr.f32.vlgmr.msra.gmra.mrb[0].mxu1 %v16_v23  ;;  %191 = vmatprep.mubr.f32.mxu0 %v23_v24 }
  0x2a   :  { %301 = vmatprep.mubr.msk.f32.mxu1 %vm104_vm0, %v21_v2 }
  0x2c   :  { %192 = vmatmul.mubr.f32.gmra.mrb[4].mxu0 %v22_v25 }
  0x2d   :  { %272 = vmatmul.mubr.f32.gmra.mrb[2].mxu1 %v20_v26  ;;  %196 = vmatprep.mubr.f32.mxu0 %v27_v27 }
  0x2e   :  { %302 = vmatprep.mubr.msk.f32.mxu1 %vm104_vm0, %v25_v28 }
  0x30   :  { %197 = vmatmul.mubr.f32.gmra.mrb[6].mxu0 %v26_v29 }
  0x31   :  { %277 = vmatmul.mubr.f32.gmra.mrb[4].mxu1 %v24_v30 }
  0x32   :  { %303 = vmatprep.mubr.msk.f32.mxu1 %vm104_vm0, %v29_v31 }
  0x35   :  { %282 = vmatmul.mubr.f32.gmra.mrb[6].mxu1 %v28_v32 }
  0x90   :  { %v87_v33 = vpop.permute.xlu0 %86 }
  0x92   :  { %v97_v45 = vpop.permute.xlu1 %96 }
  0x94   :  { %v92_v37 = vpop.permute.xlu0 %91 }
  0x96   :  { %v102_v62 = vpop.permute.xlu1 %101 }
  0xf7   :  { %v336_v34 = vpop.f32.mrb[0].mxu0 }
  0xf8   :  { %v337_v35 = vpop.f32.mrb[1].mxu0 }
  0xf9   :  { %v338_v36 = vadd.f32 %v337_v35, %v336_v34 }
  0xfb   :  { %v184_v38 = vadd.f32 %v338_v36, %v87_v33  ;;  %v339_v39 = vpop.f32.mrb[2].mxu0 }
  0xfc   :  { %v268_v40 = vpop.f32.mrb[0].mxu1  ;;  %v340_v41 = vpop.f32.mrb[3].mxu0 }
  0xfd   :  { %v270_v42 = vpop.f32.mrb[1].mxu1  ;;  %v269_v43 = vadd.f32 %v268_v40, %v184_v38  ;;  %v341_v44 = vadd.f32 %v340_v41, %v339_v39 }
  0xff   :  { %v287_v46 = vmax.f32 %v269_v43, 0.0  ;;  %v189_v47 = vadd.f32 %v341_v44, %v92_v37  ;;  %v342_v48 = vpop.f32.mrb[4].mxu0 }
 0x100   :  { %v273_v49 = vpop.f32.mrb[2].mxu1  ;;  %v343_v50 = vpop.f32.mrb[5].mxu0 }
 0x101   :  { %v275_v51 = vpop.f32.mrb[3].mxu1  ;;  %292 = vst.msk [vmem:[%s675_s3] sm:$0xff] %vm291_vm1, %v287_v46  ;;  %v274_v52 = vadd.f32 %v273_v49, %v189_v47  ;;  %v344_v53 = vadd.f32 %v343_v50, %v342_v48 }
 0x103   :  { %v288_v54 = vmax.f32 %v274_v52, 0.0  ;;  %v345_v55 = vpop.f32.mrb[6].mxu0  ;;  %v194_v56 = vadd.f32 %v344_v53, %v97_v45 }
 0x104   :  { %v278_v57 = vpop.f32.mrb[4].mxu1  ;;  %v346_v58 = vpop.f32.mrb[7].mxu0 }
 0x105   :  { %v280_v59 = vpop.f32.mrb[5].mxu1  ;;  %293 = vst.msk [vmem:[%s675_s3 + $0x8] sm:$0xff] %vm291_vm1, %v288_v54  ;;  %v279_v60 = vadd.f32 %v278_v57, %v194_v56  ;;  %v347_v61 = vadd.f32 %v346_v58, %v345_v55 }
 0x107   :  { %v289_v63 = vmax.f32 %v279_v60, 0.0  ;;  %v199_v0 = vadd.f32 %v347_v61, %v102_v62 }
 0x108   :  { %v283_v1 = vpop.f32.mrb[6].mxu1 }
 0x109   :  { %v285_v3 = vpop.f32.mrb[7].mxu1  ;;  %294 = vst.msk [vmem:[%s675_s3 + $0x10] sm:$0xff] %vm291_vm1, %v289_v63  ;;  %v284_v4 = vadd.f32 %v283_v1, %v199_v0 }
 0x10b   :  { %v290_v5 = vmax.f32 %v284_v4, 0.0 }
 0x10d   :  { %295 = vst.msk [vmem:[%s675_s3 + $0x18] sm:$0xff] %vm291_vm1, %v290_v5 }

// kernel: dqn_forward.6
= control target key start
LH: loop header
LB: loop body
LE: loop exit
PB: predicated region body
PF: predicated region fallthrough
CT: control target
= control target key end

     0   :  { %v797_v3 = vmov 0   ;;  %vm166_vm0 = vcmask 261120   ;;  %vm523_vm1 = vcmask 15360   ;;  %s1234_s1 = inlined_call_operand.vmem [shape: f32[800,2], index: 1, kind: input, shape index: {}]   ;;  %s1235_s0 = inlined_call_operand.vmem [shape: f32[32,800], index: 0, kind: input, shape index: {}]   ;;  %s1236_s2 = inlined_call_operand.vmem [shape: f32[32,1], index: 2, kind: input, shape index: {}]   ;;  %s1237_s3 = inlined_call_operand.vmem [shape: f32[32,2], index: 3, kind: output, shape index: {}]  }
   0x1   :  { %v58_v0 = vld [vmem:[%s1234_s1 + $0x80] sm:$0xff]  ;;  %v59_v1 = vld [vmem:[%s1234_s1 + $0x88] sm:$0xff]  ;;  %795 = vset.pattern.permute.xlu0 %v797_v3  ;;  %796 = vset.pattern.permute.xlu1 %v797_v3  ;;  %v60_v12 = vld [vmem:[%s1234_s1 + $0x90] sm:$0xff] }
   0x2   :  { %v42_v2 = vld [vmem:[%s1234_s1] sm:$0xff]  ;;  %v690_v4 = vpack.c.bf16 %v59_v1, %v58_v0  ;;  %v43_v5 = vld [vmem:[%s1234_s1 + $0x8] sm:$0xff]  ;;  %v61_v14 = vld [vmem:[%s1234_s1 + $0x98] sm:$0xff] }
   0x3   :  { %v90_v6 = vld [vmem:[%s1234_s1 + $0x180] sm:$0xff]  ;;  %v91_v7 = vld [vmem:[%s1234_s1 + $0x188] sm:$0xff]  ;;  %v692_v8 = vpack.c.bf16 %v43_v5, %v42_v2  ;;  %v44_v15 = vld [vmem:[%s1234_s1 + $0x10] sm:$0xff]  ;;  %v694_v17 = vpack.c.bf16 %v61_v14, %v60_v12 }
   0x4   :  { %v722_v9 = vpack.c.bf16 %v91_v7, %v90_v6  ;;  %v74_v10 = vld [vmem:[%s1234_s1 + $0x100] sm:$0xff]  ;;  %v75_v11 = vld [vmem:[%s1234_s1 + $0x108] sm:$0xff]  ;;  %691 = vmatprep.subr.bf16.mxu0 %v690_v4  ;;  %v45_v16 = vld [vmem:[%s1234_s1 + $0x18] sm:$0xff] }
   0x5   :  { %v724_v13 = vpack.c.bf16 %v75_v11, %v74_v10  ;;  %693 = vmatpush3.bf16.msra.mxu0 %v692_v8  ;;  %v696_v18 = vpack.c.bf16 %v45_v16, %v44_v15  ;;  %v92_v19 = vld [vmem:[%s1234_s1 + $0x190] sm:$0xff]  ;;  %v93_v20 = vld [vmem:[%s1234_s1 + $0x198] sm:$0xff]  ;;  %v62_v24 = vld [vmem:[%s1234_s1 + $0xa0] sm:$0xff] }
   0x6   :  { %723 = vmatprep.subr.bf16.mxu1 %v722_v9  ;;  %v76_v21 = vld [vmem:[%s1234_s1 + $0x110] sm:$0xff]  ;;  %v726_v22 = vpack.c.bf16 %v93_v20, %v92_v19  ;;  %v77_v23 = vld [vmem:[%s1234_s1 + $0x118] sm:$0xff]  ;;  %v63_v25 = vld [vmem:[%s1234_s1 + $0xa8] sm:$0xff]  ;;  %695 = vmatprep.subr.bf16.mxu0 %v694_v17 }
   0x7   :  { %725 = vmatpush3.bf16.msra.mxu1 %v724_v13  ;;  %v728_v26 = vpack.c.bf16 %v77_v23, %v76_v21  ;;  %v698_v27 = vpack.c.bf16 %v63_v25, %v62_v24  ;;  %v46_v28 = vld [vmem:[%s1234_s1 + $0x20] sm:$0xff]  ;;  %v47_v29 = vld [vmem:[%s1234_s1 + $0x28] sm:$0xff]  ;;  %v64_v36 = vld [vmem:[%s1234_s1 + $0xb0] sm:$0xff] }
   0x8   :  { %v94_v30 = vld [vmem:[%s1234_s1 + $0x1a0] sm:$0xff]  ;;  %727 = vmatprep.subr.bf16.mxu1 %v726_v22  ;;  %v95_v31 = vld [vmem:[%s1234_s1 + $0x1a8] sm:$0xff]  ;;  %v700_v34 = vpack.c.bf16 %v47_v29, %v46_v28  ;;  %v65_v37 = vld [vmem:[%s1234_s1 + $0xb8] sm:$0xff] }
   0x9   :  { %v78_v32 = vld [vmem:[%s1234_s1 + $0x120] sm:$0xff]  ;;  %v79_v33 = vld [vmem:[%s1234_s1 + $0x128] sm:$0xff]  ;;  %697 = vmatpush3.bf16.msra.mxu0 %v696_v18  ;;  %v730_v35 = vpack.c.bf16 %v95_v31, %v94_v30  ;;  %v48_v38 = vld [vmem:[%s1234_s1 + $0x30] sm:$0xff]  ;;  %v702_v40 = vpack.c.bf16 %v65_v37, %v64_v36 }
   0xa   :  { %699 = vmatprep.subr.bf16.mxu0 %v698_v27  ;;  %v732_v39 = vpack.c.bf16 %v79_v33, %v78_v32  ;;  %v49_v41 = vld [vmem:[%s1234_s1 + $0x38] sm:$0xff]  ;;  %v96_v42 = vld [vmem:[%s1234_s1 + $0x1b0] sm:$0xff]  ;;  %v66_v47 = vld [vmem:[%s1234_s1 + $0xc0] sm:$0xff] }
   0xb   :  { %729 = vmatpush3.bf16.msra.mxu1 %v728_v26  ;;  %v97_v43 = vld [vmem:[%s1234_s1 + $0x1b8] sm:$0xff]  ;;  %v80_v45 = vld [vmem:[%s1234_s1 + $0x130] sm:$0xff]  ;;  %v67_v48 = vld [vmem:[%s1234_s1 + $0xc8] sm:$0xff]  ;;  %v704_v49 = vpack.c.bf16 %v49_v41, %v48_v38 }
   0xc   :  { %731 = vmatprep.subr.bf16.mxu1 %v730_v35  ;;  %v734_v44 = vpack.c.bf16 %v97_v43, %v96_v42  ;;  %v81_v46 = vld [vmem:[%s1234_s1 + $0x138] sm:$0xff]  ;;  %v98_v50 = vld [vmem:[%s1234_s1 + $0x1c0] sm:$0xff]  ;;  %v99_v51 = vld [vmem:[%s1234_s1 + $0x1c8] sm:$0xff]  ;;  %v706_v53 = vpack.c.bf16 %v67_v48, %v66_v47 }
   0xd   :  { %701 = vmatpush3.bf16.msra.mxu0 %v700_v34  ;;  %v736_v52 = vpack.c.bf16 %v81_v46, %v80_v45  ;;  %v50_v54 = vld [vmem:[%s1234_s1 + $0x40] sm:$0xff]  ;;  %v51_v55 = vld [vmem:[%s1234_s1 + $0x48] sm:$0xff]  ;;  %v738_v57 = vpack.c.bf16 %v99_v51, %v98_v50  ;;  %v68_v59 = vld [vmem:[%s1234_s1 + $0xd0] sm:$0xff] }
   0xe   :  { %703 = vmatprep.subr.bf16.mxu0 %v702_v40  ;;  %v82_v56 = vld [vmem:[%s1234_s1 + $0x140] sm:$0xff]  ;;  %v83_v58 = vld [vmem:[%s1234_s1 + $0x148] sm:$0xff]  ;;  %v69_v60 = vld [vmem:[%s1234_s1 + $0xd8] sm:$0xff]  ;;  %v708_v63 = vpack.c.bf16 %v51_v55, %v50_v54 }
   0xf   :  { %733 = vmatpush3.bf16.msra.mxu1 %v732_v39  ;;  %v100_v61 = vld [vmem:[%s1234_s1 + $0x1d0] sm:$0xff]  ;;  %v101_v62 = vld [vmem:[%s1234_s1 + $0x1d8] sm:$0xff]  ;;  %v740_v0 = vpack.c.bf16 %v83_v58, %v82_v56  ;;  %v710_v1 = vpack.c.bf16 %v69_v60, %v68_v59  ;;  %v70_v7 = vld [vmem:[%s1234_s1 + $0xe0] sm:$0xff] }
  0x10   :  { %735 = vmatprep.subr.bf16.mxu1 %v734_v44  ;;  %v52_v2 = vld [vmem:[%s1234_s1 + $0x50] sm:$0xff]  ;;  %v53_v3 = vld [vmem:[%s1234_s1 + $0x58] sm:$0xff]  ;;  %v742_v5 = vpack.c.bf16 %v101_v62, %v100_v61  ;;  %v71_v8 = vld [vmem:[%s1234_s1 + $0xe8] sm:$0xff] }
  0x11   :  { %705 = vmatpush3.bf16.msra.mxu0 %v704_v49  ;;  %v84_v4 = vld [vmem:[%s1234_s1 + $0x150] sm:$0xff]  ;;  %v85_v6 = vld [vmem:[%s1234_s1 + $0x158] sm:$0xff]  ;;  %v102_v9 = vld [vmem:[%s1234_s1 + $0x1e0] sm:$0xff]  ;;  %v712_v11 = vpack.c.bf16 %v53_v3, %v52_v2  ;;  %v714_v15 = vpack.c.bf16 %v71_v8, %v70_v7 }
  0x12   :  { %707 = vmatprep.subr.bf16.mxu0 %v706_v53  ;;  %v103_v10 = vld [vmem:[%s1234_s1 + $0x1e8] sm:$0xff]  ;;  %v54_v12 = vld [vmem:[%s1234_s1 + $0x60] sm:$0xff]  ;;  %v744_v14 = vpack.c.bf16 %v85_v6, %v84_v4  ;;  %v72_v20 = vld [vmem:[%s1234_s1 + $0xf0] sm:$0xff] }
  0x13   :  { %737 = vmatpush3.bf16.msra.mxu1 %v736_v52  ;;  %v15_v13 = vld [vmem:[%s1235_s0 + $0x8] sm:$0xff]  ;;  %v86_v17 = vld [vmem:[%s1234_s1 + $0x160] sm:$0xff]  ;;  %v746_v19 = vpack.c.bf16 %v103_v10, %v102_v9  ;;  %v73_v21 = vld [vmem:[%s1234_s1 + $0xf8] sm:$0xff] }
  0x14   :  { %739 = vmatprep.subr.bf16.mxu1 %v738_v57  ;;  %v55_v16 = vld [vmem:[%s1234_s1 + $0x68] sm:$0xff]  ;;  %243 = vmatprep.mubr.f32.mxu0 %v15_v13  ;;  %v17_v22 = vld [vmem:[%s1235_s0 + $0x18] sm:$0xff]  ;;  %v104_v23 = vld [vmem:[%s1234_s1 + $0x1f0] sm:$0xff]  ;;  %v718_v27 = vpack.c.bf16 %v73_v21, %v72_v20 }
  0x15   :  { %709 = vmatpush3.bf16.msra.mxu0 %v708_v63  ;;  %v87_v18 = vld [vmem:[%s1234_s1 + $0x168] sm:$0xff]  ;;  %v105_v24 = vld [vmem:[%s1234_s1 + $0x1f8] sm:$0xff]  ;;  %328 = vmatprep.mubr.f32.mxu1 %v17_v22  ;;  %v716_v25 = vpack.c.bf16 %v55_v16, %v54_v12  ;;  %v56_v28 = vld [vmem:[%s1234_s1 + $0x70] sm:$0xff] }
  0x16   :  { %711 = vmatprep.subr.bf16.mxu0 %v710_v1  ;;  %v748_v26 = vpack.c.bf16 %v87_v18, %v86_v17  ;;  %v57_v29 = vld [vmem:[%s1234_s1 + $0x78] sm:$0xff]  ;;  %v88_v30 = vld [vmem:[%s1234_s1 + $0x170] sm:$0xff]  ;;  %v750_v31 = vpack.c.bf16 %v105_v24, %v104_v23  ;;  %v122_v33 = vld [vmem:[%s1234_s1 + $0x280] sm:$0xff] }
  0x17   :  { %741 = vmatpush3.bf16.msra.mxu1 %v740_v0  ;;  %v89_v32 = vld [vmem:[%s1234_s1 + $0x178] sm:$0xff]  ;;  %v123_v34 = vld [vmem:[%s1234_s1 + $0x288] sm:$0xff]  ;;  %v720_v35 = vpack.c.bf16 %v57_v29, %v56_v28  ;;  %v106_v38 = vld [vmem:[%s1234_s1 + $0x200] sm:$0xff] }
  0x18   :  { %743 = vmatprep.subr.bf16.mxu1 %v742_v5  ;;  %v752_v36 = vpack.c.bf16 %v89_v32, %v88_v30  ;;  %v754_v37 = vpack.c.bf16 %v123_v34, %v122_v33  ;;  %v107_v39 = vld [vmem:[%s1234_s1 + $0x208] sm:$0xff]  ;;  %v124_v40 = vld [vmem:[%s1234_s1 + $0x290] sm:$0xff]  ;;  %v125_v41 = vld [vmem:[%s1234_s1 + $0x298] sm:$0xff] }
  0x19   :  { %713 = vmatpush3.bf16.msra.mxu0 %v712_v11  ;;  %v14_v42 = vld [vmem:[%s1235_s0] sm:$0xff]  ;;  %v756_v43 = vpack.c.bf16 %v107_v39, %v106_v38  ;;  %v16_v44 = vld [vmem:[%s1235_s0 + $0x10] sm:$0xff]  ;;  %v758_v45 = vpack.c.bf16 %v125_v41, %v124_v40  ;;  %v109_v47 = vld [vmem:[%s1234_s1 + $0x218] sm:$0xff] }
  0x1a   :  { %715 = vmatprep.subr.bf16.mxu0 %v714_v15  ;;  %v108_v46 = vld [vmem:[%s1234_s1 + $0x210] sm:$0xff]  ;;  %v126_v48 = vld [vmem:[%s1234_s1 + $0x2a0] sm:$0xff]  ;;  %v127_v49 = vld [vmem:[%s1234_s1 + $0x2a8] sm:$0xff] }
  0x1b   :  { %745 = vmatpush3.bf16.msra.mxu1 %v744_v14  ;;  %v22_v50 = vld [vmem:[%s1235_s0 + $0x40] sm:$0xff]  ;;  %v24_v51 = vld [vmem:[%s1235_s0 + $0x50] sm:$0xff]  ;;  %v139_v53 = vld [vmem:[%s1234_s1 + $0x308] sm:$0xff]  ;;  %v760_v54 = vpack.c.bf16 %v109_v47, %v108_v46  ;;  %v762_v58 = vpack.c.bf16 %v127_v49, %v126_v48 }
  0x1c   :  { %747 = vmatprep.subr.bf16.mxu1 %v746_v19  ;;  %v138_v52 = vld [vmem:[%s1234_s1 + $0x300] sm:$0xff]  ;;  %v21_v56 = vld [vmem:[%s1235_s0 + $0x38] sm:$0xff]  ;;  %v111_v59 = vld [vmem:[%s1234_s1 + $0x228] sm:$0xff] }
  0x1d   :  { %717 = vmatpush3.bf16.msra.mxu0 %v716_v25  ;;  %v110_v55 = vld [vmem:[%s1234_s1 + $0x220] sm:$0xff]  ;;  %v786_v57 = vpack.c.bf16 %v139_v53, %v138_v52  ;;  %v128_v60 = vld [vmem:[%s1234_s1 + $0x2b0] sm:$0xff]  ;;  %v23_v61 = vld [vmem:[%s1235_s0 + $0x48] sm:$0xff] }
  0x1e   :  { %719 = vmatprep.subr.bf16.mxu0 %v718_v27  ;;  %v129_v62 = vld [vmem:[%s1234_s1 + $0x2b8] sm:$0xff]  ;;  %v140_v0 = vld [vmem:[%s1234_s1 + $0x310] sm:$0xff]  ;;  %v31_v1 = vld [vmem:[%s1235_s0 + $0x88] sm:$0xff]  ;;  %v764_v3 = vpack.c.bf16 %v111_v59, %v110_v55 }
  0x1f   :  { %749 = vmatpush3.bf16.msra.mxu1 %v748_v26  ;;  %v29_v63 = vld [vmem:[%s1235_s0 + $0x78] sm:$0xff]  ;;  %v28_v4 = vld [vmem:[%s1235_s0 + $0x70] sm:$0xff]  ;;  %v766_v6 = vpack.c.bf16 %v129_v62, %v128_v60  ;;  %v30_v9 = vld [vmem:[%s1235_s0 + $0x80] sm:$0xff] }
  0x20   :  { %751 = vmatprep.subr.bf16.mxu1 %v750_v31  ;;  %v141_v2 = vld [vmem:[%s1234_s1 + $0x318] sm:$0xff]  ;;  %v112_v7 = vld [vmem:[%s1234_s1 + $0x230] sm:$0xff]  ;;  %v130_v10 = vld [vmem:[%s1234_s1 + $0x2c0] sm:$0xff] }
  0x21   :  { %721 = vmatpush3.bf16.msra.mxu0 %v720_v35  ;;  %v790_v5 = vpack.c.bf16 %v141_v2, %v140_v0  ;;  %v113_v8 = vld [vmem:[%s1234_s1 + $0x238] sm:$0xff]  ;;  %v131_v11 = vld [vmem:[%s1234_s1 + $0x2c8] sm:$0xff]  ;;  %v36_v12 = vld [vmem:[%s1235_s0 + $0xb0] sm:$0xff] }
  0x22   :  { %755 = vmatprep.subr.bf16.mxu0 %v754_v37  ;;  %v38_v13 = vld [vmem:[%s1235_s0 + $0xc0] sm:$0xff]  ;;  %v768_v15 = vpack.c.bf16 %v113_v8, %v112_v7  ;;  %v35_v16 = vld [vmem:[%s1235_s0 + $0xa8] sm:$0xff]  ;;  %v144_v17 = vld [vmem:[%s1236_s2 + $0x10] sm:$0xff]  ;;  %v770_v18 = vpack.c.bf16 %v131_v11, %v130_v10 }
  0x23   :  { %753 = vmatpush3.bf16.msra.mxu1 %v752_v36  ;;  %v142_v14 = vld [vmem:[%s1236_s2] sm:$0xff]  ;;  %v115_v20 = vld [vmem:[%s1234_s1 + $0x248] sm:$0xff]  ;;  %v37_v21 = vld [vmem:[%s1235_s0 + $0xb8] sm:$0xff]  ;;  %158 = vperm.xlu1 %796, %v144_v17  }
  0x24   :  { %244 = vmatmul.mubr.f32.vlgmr.msra.gmra.mrb[0].mxu0 %v14_v42  ;;  %787 = vmatprep.subr.bf16.mxu1 %v786_v57  ;;  %v114_v19 = vld [vmem:[%s1234_s1 + $0x240] sm:$0xff]  ;;  %v132_v22 = vld [vmem:[%s1234_s1 + $0x2d0] sm:$0xff]  ;;  %v133_v23 = vld [vmem:[%s1234_s1 + $0x2d8] sm:$0xff] }
  0x25   :  { %757 = vmatpush3.bf16.msra.mxu0 %v756_v43  ;;  %248 = vmatprep.mubr.f32.mxu0 %v22_v50  ;;  %v19_v24 = vld [vmem:[%s1235_s0 + $0x28] sm:$0xff]  ;;  %v20_v25 = vld [vmem:[%s1235_s0 + $0x30] sm:$0xff]  ;;  %v772_v27 = vpack.c.bf16 %v115_v20, %v114_v19  ;;  %v145_v28 = vld [vmem:[%s1236_s2 + $0x18] sm:$0xff]  ;;  %v774_v29 = vpack.c.bf16 %v133_v23, %v132_v22 }
  0x26   :  { %329 = vmatmul.mubr.f32.vlgmr.msra.gmra.mrb[0].mxu1 %v16_v44  ;;  %759 = vmatprep.subr.bf16.mxu0 %v758_v45  ;;  %v143_v26 = vld [vmem:[%s1236_s2 + $0x8] sm:$0xff]  ;;  %v116_v30 = vld [vmem:[%s1234_s1 + $0x250] sm:$0xff]  ;;  %v117_v31 = vld [vmem:[%s1234_s1 + $0x258] sm:$0xff] }
  0x27   :  { %333 = vmatprep.mubr.f32.mxu1 %v24_v51  ;;  %789 = vmatpush3.bf16.msra.mxu1 %v786_v57  ;;  %v27_v32 = vld [vmem:[%s1235_s0 + $0x68] sm:$0xff]  ;;  %v134_v33 = vld [vmem:[%s1234_s1 + $0x2e0] sm:$0xff]  ;;  %v776_v36 = vpack.c.bf16 %v117_v31, %v116_v30  ;;  %v41_v40 = vld [vmem:[%s1235_s0 + $0xd8] sm:$0xff] }
  0x28   :  { %249 = vmatmul.mubr.f32.gmra.mrb[2].mxu0 %v21_v56  ;;  %791 = vmatprep.subr.bf16.mxu1 %v790_v5  ;;  %v135_v34 = vld [vmem:[%s1234_s1 + $0x2e8] sm:$0xff]  ;;  %v34_v35 = vld [vmem:[%s1235_s0 + $0xa0] sm:$0xff]  ;;  %v136_v41 = vld [vmem:[%s1234_s1 + $0x2f0] sm:$0xff] }
  0x29   :  { %761 = vmatpush3.bf16.msra.mxu0 %v760_v54  ;;  %253 = vmatprep.mubr.f32.mxu0 %v29_v63  ;;  %v778_v37 = vpack.c.bf16 %v135_v34, %v134_v33  ;;  %v118_v38 = vld [vmem:[%s1234_s1 + $0x260] sm:$0xff]  ;;  %v119_v39 = vld [vmem:[%s1234_s1 + $0x268] sm:$0xff]  ;;  %v137_v42 = vld [vmem:[%s1234_s1 + $0x2f8] sm:$0xff] }
  0x2a   :  { %334 = vmatmul.mubr.f32.gmra.mrb[2].mxu1 %v23_v61  ;;  %763 = vmatprep.subr.bf16.mxu0 %v762_v58  ;;  %v780_v43 = vpack.c.bf16 %v119_v39, %v118_v38  ;;  %v782_v44 = vpack.c.bf16 %v137_v42, %v136_v41  ;;  %v120_v45 = vld [vmem:[%s1234_s1 + $0x270] sm:$0xff]  ;;  %v121_v46 = vld [vmem:[%s1234_s1 + $0x278] sm:$0xff]  ;;  %v18_v48 = vld [vmem:[%s1235_s0 + $0x20] sm:$0xff] }
  0x2b   :  { %338 = vmatprep.mubr.f32.mxu1 %v31_v1  ;;  %793 = vmatpush3.bf16.msra.mxu1 %v790_v5  ;;  %v784_v47 = vpack.c.bf16 %v121_v46, %v120_v45  ;;  %v26_v49 = vld [vmem:[%s1235_s0 + $0x60] sm:$0xff]  ;;  %v25_v50 = vld [vmem:[%s1235_s0 + $0x58] sm:$0xff]  ;;  %v32_v52 = vld [vmem:[%s1235_s0 + $0x90] sm:$0xff] }
  0x2c   :  { %254 = vmatmul.mubr.f32.gmra.mrb[4].mxu0 %v28_v4  ;;  %148 = vperm.xlu0 %795, %v142_v14   ;;  %v33_v51 = vld [vmem:[%s1235_s0 + $0x98] sm:$0xff]  ;;  %v40_v53 = vld [vmem:[%s1235_s0 + $0xd0] sm:$0xff]  ;;  %v39_v54 = vld [vmem:[%s1235_s0 + $0xc8] sm:$0xff] }
  0x2d   :  { %765 = vmatpush3.bf16.msra.mxu0 %v764_v3  ;;  %258 = vmatprep.mubr.f32.mxu0 %v36_v12 }
  0x2e   :  { %339 = vmatmul.mubr.f32.gmra.mrb[4].mxu1 %v30_v9  ;;  %767 = vmatprep.subr.bf16.mxu0 %v766_v6 }
  0x2f   :  { %343 = vmatprep.mubr.f32.mxu1 %v38_v13  ;;  %163 = vperm.xlu1 %796, %v145_v28  }
  0x30   :  { %259 = vmatmul.mubr.f32.gmra.mrb[6].mxu0 %v35_v16  ;;  %153 = vperm.xlu0 %795, %v143_v26  }
  0x31   :  { %769 = vmatpush3.bf16.msra.mxu0 %v768_v15  ;;  %413 = vmatprep.mubr.f32.mxu0 %v19_v24 }
  0x32   :  { %344 = vmatmul.mubr.f32.gmra.mrb[6].mxu1 %v37_v21  ;;  %771 = vmatprep.subr.bf16.mxu0 %v770_v18 }
  0x33   :  { %684 = vmatprep.mubr.msk.f32.mxu1 %vm166_vm0, %v20_v25 }
  0x35   :  { %773 = vmatpush3.bf16.msra.mxu0 %v772_v27 }
  0x36   :  { %685 = vmatmul.mubr.msk.f32.vlgmr.msra.gmra.mrb[8].mxu1 %vm166_vm0, %v27_v32  ;;  %775 = vmatprep.subr.bf16.mxu0 %v774_v29 }
  0x37   :  { %687 = vmatprep.mubr.msk.f32.mxu1 %vm166_vm0, %v34_v35 }
  0x39   :  { %777 = vmatpush3.bf16.msra.mxu0 %v776_v36 }
  0x3a   :  { %688 = vmatmul.mubr.msk.f32.gmra.mrb[10].mxu1 %vm166_vm0, %v41_v40  ;;  %779 = vmatprep.subr.bf16.mxu0 %v778_v37 }
  0x3d   :  { %781 = vmatpush3.bf16.msra.mxu0 %v780_v43 }
  0x3e   :  { %783 = vmatprep.subr.bf16.mxu0 %v782_v44 }
  0x41   :  { %785 = vmatpush3.bf16.msra.mxu0 %v784_v47 }
  0x44   :  { %414 = vmatmul.mubr.f32.vlgmr.msra.gmra.mrb[8].mxu0 %v18_v48 }
  0x45   :  { %418 = vmatprep.mubr.f32.mxu0 %v26_v49 }
  0x48   :  { %419 = vmatmul.mubr.f32.gmra.mrb[10].mxu0 %v25_v50 }
  0x49   :  { %423 = vmatprep.mubr.f32.mxu0 %v33_v51 }
  0x4c   :  { %424 = vmatmul.mubr.f32.gmra.mrb[12].mxu0 %v32_v52 }
  0x4d   :  { %428 = vmatprep.mubr.f32.mxu0 %v40_v53 }
  0x50   :  { %429 = vmatmul.mubr.f32.gmra.mrb[14].mxu0 %v39_v54 }
  0xa2   :  { %v159_v6 = vpop.permute.xlu1 %158 }
  0xab   :  { %v149_v56 = vpop.permute.xlu0 %148 }
  0xae   :  { %v164_v18 = vpop.permute.xlu1 %163 }
  0xaf   :  { %v154_v0 = vpop.permute.xlu0 %153 }
  0xf7   :  { %v568_v55 = vpop.f32.mrb[0].mxu0 }
  0xf8   :  { %v569_v57 = vpop.f32.mrb[1].mxu0 }
  0xf9   :  { %v612_v58 = vpop.f32.mrb[0].mxu1  ;;  %v570_v59 = vadd.f32 %v569_v57, %v568_v55 }
  0xfa   :  { %v613_v60 = vpop.f32.mrb[1].mxu1 }
  0xfb   :  { %v614_v61 = vadd.f32 %v613_v60, %v612_v58  ;;  %v246_v62 = vadd.f32 %v570_v59, %v149_v56  ;;  %v571_v63 = vpop.f32.mrb[2].mxu0 }
  0xfc   :  { %v572_v1 = vpop.f32.mrb[3].mxu0 }
  0xfd   :  { %v615_v2 = vpop.f32.mrb[2].mxu1  ;;  %v331_v3 = vadd.f32 %v614_v61, %v246_v62  ;;  %v573_v4 = vadd.f32 %v572_v1, %v571_v63 }
  0xfe   :  { %v616_v5 = vpop.f32.mrb[3].mxu1 }
  0xff   :  { %v617_v7 = vadd.f32 %v616_v5, %v615_v2  ;;  %v251_v8 = vadd.f32 %v573_v4, %v154_v0  ;;  %v574_v9 = vpop.f32.mrb[4].mxu0 }
 0x100   :  { %v575_v10 = vpop.f32.mrb[5].mxu0 }
 0x101   :  { %v618_v11 = vpop.f32.mrb[4].mxu1  ;;  %v336_v12 = vadd.f32 %v617_v7, %v251_v8  ;;  %v576_v13 = vadd.f32 %v575_v10, %v574_v9 }
 0x102   :  { %v619_v14 = vpop.f32.mrb[5].mxu1 }
 0x103   :  { %v620_v15 = vadd.f32 %v619_v14, %v618_v11  ;;  %v256_v16 = vadd.f32 %v576_v13, %v159_v6  ;;  %v577_v17 = vpop.f32.mrb[6].mxu0 }
 0x104   :  { %v578_v19 = vpop.f32.mrb[7].mxu0 }
 0x105   :  { %v621_v20 = vpop.f32.mrb[6].mxu1  ;;  %v341_v21 = vadd.f32 %v620_v15, %v256_v16  ;;  %v579_v22 = vadd.f32 %v578_v19, %v577_v17 }
 0x106   :  { %v622_v23 = vpop.f32.mrb[7].mxu1 }
 0x107   :  { %v623_v24 = vadd.f32 %v622_v23, %v621_v20  ;;  %v261_v25 = vadd.f32 %v579_v22, %v164_v18 }
 0x109   :  { %v686_v26 = vpop.f32.mrb[8].mxu1  ;;  %v346_v27 = vadd.f32 %v623_v24, %v261_v25 }
 0x10a   :  { %v500_v28 = vpop.f32.mrb[9].mxu1 }
 0x10d   :  { %v689_v29 = vpop.f32.mrb[10].mxu1 }
 0x10e   :  { %v510_v30 = vpop.f32.mrb[11].mxu1 }
 0x117   :  { %v656_v31 = vpop.f32.mrb[8].mxu0 }
 0x118   :  { %v657_v32 = vpop.f32.mrb[9].mxu0 }
 0x119   :  { %v658_v33 = vadd.f32 %v657_v32, %v656_v31 }
 0x11b   :  { %v659_v34 = vpop.f32.mrb[10].mxu0  ;;  %v416_v35 = vadd.f32 %v658_v33, %v331_v3 }
 0x11c   :  { %v660_v36 = vpop.f32.mrb[11].mxu0 }
 0x11d   :  { %v661_v37 = vadd.f32 %v660_v36, %v659_v34  ;;  %v501_v38 = vadd.f32 %v500_v28, %v416_v35 }
 0x11f   :  { %v421_v39 = vadd.f32 %v661_v37, %v336_v12  ;;  %v519_v40 = vmax.f32 %v501_v38, 0.0  ;;  %v662_v41 = vpop.f32.mrb[12].mxu0 }
 0x120   :  { %v663_v42 = vpop.f32.mrb[13].mxu0 }
 0x121   :  { %v506_v43 = vadd.f32 %v686_v26, %v421_v39  ;;  %524 = vst.msk [vmem:[%s1237_s3] sm:$0xff] %vm523_vm1, %v519_v40  ;;  %v664_v44 = vadd.f32 %v663_v42, %v662_v41 }
 0x123   :  { %v520_v45 = vmax.f32 %v506_v43, 0.0  ;;  %v665_v46 = vpop.f32.mrb[14].mxu0  ;;  %v426_v47 = vadd.f32 %v664_v44, %v341_v21 }
 0x124   :  { %v666_v48 = vpop.f32.mrb[15].mxu0 }
 0x125   :  { %525 = vst.msk [vmem:[%s1237_s3 + $0x8] sm:$0xff] %vm523_vm1, %v520_v45  ;;  %v667_v49 = vadd.f32 %v666_v48, %v665_v46  ;;  %v511_v50 = vadd.f32 %v510_v30, %v426_v47 }
 0x127   :  { %v431_v51 = vadd.f32 %v667_v49, %v346_v27  ;;  %v521_v52 = vmax.f32 %v511_v50, 0.0 }
 0x129   :  { %v516_v53 = vadd.f32 %v689_v29, %v431_v51  ;;  %526 = vst.msk [vmem:[%s1237_s3 + $0x10] sm:$0xff] %vm523_vm1, %v521_v52 }
 0x12b   :  { %v522_v54 = vmax.f32 %v516_v53, 0.0 }
 0x12d   :  { %527 = vst.msk [vmem:[%s1237_s3 + $0x18] sm:$0xff] %vm523_vm1, %v522_v54 }

// kernel: dqn_forward.7
= control target key start
LH: loop header
LB: loop body
LE: loop exit
PB: predicated region body
PF: predicated region fallthrough
CT: control target
= control target key end

     0   :  { %vm31_vm0 = vcmask 1041408   ;;  %v229_v0 = vmov 0.0|0.0   ;;  %v230_v3 = vmov 0.0   ;;  %vm27_vm1 = vcmask 15360   ;;  %s291_s1 = inlined_call_operand.vmem [shape: f32[32,2], index: 1, kind: input, shape index: {}]   ;;  %s292_s3 = inlined_call_operand.vmem [shape: f32[2,2], index: 3, kind: input, shape index: {}]   ;;  %s293_s2 = inlined_call_operand.vmem [shape: f32[5,2], index: 2, kind: input, shape index: {}]   ;;  %s294_s4 = inlined_call_operand.vmem [shape: f32[5,1], index: 4, kind: input, shape index: {}]   ;;  %s295_s0 = inlined_call_operand.vmem [shape: f32[5,32], index: 0, kind: input, shape index: {}]   ;;  %s296_s5 = inlined_call_operand.vmem [shape: f32[5,2], index: 5, kind: output, shape index: {}]  }
   0x1   :  { %218 = vmatprep.subr.bf16.mxu1 %v229_v0  ;;  %v21_v1 = vld [vmem:[%s291_s1] sm:$0xff]  ;;  %v22_v2 = vld [vmem:[%s291_s1 + $0x8] sm:$0xff]  ;;  %202 = vmatprep.subr.mxu0 %v230_v3  ;;  %v23_v4 = vld [vmem:[%s291_s1 + $0x10] sm:$0xff]  ;;  %vm231_vm2 = vmmov 0   ;;  %v232_v9 = vmov 0   ;;  %vm105_vm3 = vcmask 261120  }
   0x2   :  { %v219_v5 = vpack.c.bf16 %v22_v2, %v21_v1  ;;  %v24_v6 = vld [vmem:[%s291_s1 + $0x18] sm:$0xff]  ;;  %v26_v7 = vld [vmem:[%s292_s3] sm:$0x3]  ;;  %204 = vmatprep.mubr.msk.f32.mxu0 %vm231_vm2, %v230_v3  ;;  %215 = vmatprep.mubr.msk.f32.mxu1 %vm231_vm2, %v230_v3  ;;  %vm186_vm4 = vcmask 12288  }
   0x3   :  { %v25_v8 = vld [vmem:[%s293_s2] sm:$0x1f]  ;;  %203 = vmatpush3.msk.msra.mxu0 %vm31_vm0, %v26_v7  ;;  %228 = vset.pattern.permute.xlu0 %v232_v9  ;;  %v222_v11 = vpack.c.bf16 %v24_v6, %v23_v4 }
   0x4   :  { %v179_v10 = vld [vmem:[%s294_s4] sm:$0x1f]  ;;  %220 = vmatpush3.bf16.msra.mxu1 %v219_v5  ;;  %205 = vmatmul.mubr.msk.f32.vlgmr.msra.gmra.mrb[0].mxu0 %vm27_vm1, %v25_v8 }
   0x5   :  { %221 = vmatprep.subr.bf16.mxu1 %v229_v0  ;;  %182 = vperm.xlu0 %228, %v179_v10   ;;  %v20_v12 = vld [vmem:[%s295_s0] sm:$0x1f] }
   0x8   :  { %223 = vmatpush3.bf16.msra.mxu1 %v222_v11 }
   0xb   :  { %216 = vmatmul.mubr.msk.f32.vlgmr.msra.gmra.mrb[0].mxu1 %vm105_vm3, %v20_v12 }
  0x84   :  { %v183_v16 = vpop.permute.xlu0 %182 }
  0xd7   :  { %v101_v13 = vpop.f32.mrb[0].mxu0 }
  0xd8   :  { %v206_v14 = vpop.f32.mrb[1].mxu0 }
  0xde   :  { %v175_v15 = vpop.f32.mrb[0].mxu1 }
  0xdf   :  { %v176_v17 = vadd.f32 %v175_v15, %v101_v13  ;;  %v217_v18 = vpop.f32.mrb[1].mxu1 }
  0xe1   :  { %v185_v19 = vadd.f32 %v183_v16, %v176_v17 }
  0xe3   :  { %187 = vst.msk [vmem:[%s296_s5] sm:$0x1f] %vm186_vm4, %v185_v19 }

</bundles_post_ra>
